<compile_context>
chip_gen: v7x
topology: tpu7x:2x2x1
jax: 0.10.0
libtpu: 0.0.40
codegen_flags: <defaults>
</compile_context>

<pallas_src>
import functools
import math

import jax
import jax.numpy as jnp
from jax.experimental import pallas as pl
from jax.experimental.pallas import tpu as pltpu


def _round_up(x, m):
    return (x + m - 1) // m * m


@functools.lru_cache(maxsize=1)
def _tpu_defaults():
    """Returns (tm_default, th_default, vmem_ceiling_bytes) for this chip."""
    vmem_cap = 64 << 20  # conservative fallback == v7x physical VMEM per TC
    kind = ""
    try:
        vmem_cap = int(pltpu.get_tpu_info().vmem_capacity_bytes)
    except Exception:
        pass
    try:
        kind = jax.devices()[0].device_kind.lower()
    except Exception:
        pass
    if "v5" in kind:
        tm, th = 256, 512          # v5e is near-balanced at tm=256
    elif "v6" in kind:
        tm, th = 1024, 1024        # reach ~650 flop/byte (918 TF/s vs 1.4 TB/s)
    elif "v7" in kind or vmem_cap <= (64 << 20):
        tm, th = 512, 512          # ~310 flop/byte crossover, 64 MiB VMEM
    else:
        tm, th = 512, 512
    vmem_ceiling = int(vmem_cap * 0.82)   # headroom for compiler-internal scratch
    return tm, th, vmem_ceiling


def _bytes(shape, dt):
    return math.prod(shape) * jnp.dtype(dt).itemsize


def _tile_vmem_bytes(tm, th, d, act_dtype, w_dtype):
    """Rough per-grid-step VMEM working set (double-buffered I/O + scratch)."""
    return (
        2 * _bytes((tm, d), act_dtype)          # x tile (double buffered)
        + 2 * _bytes((d, 2 * th), w_dtype)      # fused w1/w3 tile
        + 2 * _bytes((th, d), w_dtype)          # w2^T tile
        + 2 * _bytes((tm, d), act_dtype)        # output tile
        + _bytes((tm, d), jnp.float32)          # accumulator scratch
        + _bytes((tm, 2 * th), jnp.float32)     # h13 intermediate
        + 2 * _bytes((tm, th), jnp.float32)     # gate temporaries
    )


def _ffn_kernel(x_ref, w13_ref, w2t_ref, o_ref, acc_ref, *, th):
    # x_ref:   (tm, D)     token tile
    # w13_ref: (D, 2*th)   fused [w1^T | w3^T] column tile for hidden block h
    # w2t_ref: (th, D)     row tile of W2^T
    # o_ref:   (tm, D)     output tile (written at last hidden step)
    # acc_ref: (tm, D)     f32 accumulator scratch (persists across hidden axis)
    h = pl.program_id(1)

    @pl.when(h == 0)
    def _():
        acc_ref[...] = jnp.zeros_like(acc_ref)

    x = x_ref[...]
    # One wide MXU pass for both projections.
    h13 = jnp.dot(x, w13_ref[...], preferred_element_type=jnp.float32)
    h1 = h13[:, :th]
    h3 = h13[:, th:]
    # SiLU + gate in f32 on the VPU/EUP.
    gated = (h1 * jax.nn.sigmoid(h1)) * h3
    acc_ref[...] += jnp.dot(gated.astype(w2t_ref.dtype), w2t_ref[...],
                            preferred_element_type=jnp.float32)

    @pl.when(h == pl.num_programs(1) - 1)
    def _():
        o_ref[...] = acc_ref[...].astype(o_ref.dtype)


def pack_ffn_weights(w1, w2, w3, *, th=None, dtype=None):
    """One-time (load-time) weight repack for feed_forward.

    Takes torch nn.Linear layouts: w1, w3: (H, D); w2: (D, H).
    Returns (w13p, w2tp, th):
      w13p: (D, 2*Hp) with, per hidden tile of width th, the th columns of
            w1^T followed by the th columns of w3^T (interleaved at tile
            granularity so one BlockSpec streams both projections),
      w2tp: (Hp, D) = padded w2^T,
    where Hp = H rounded up to a multiple of th (zero padding is exact:
    silu(0)*0 = 0 and the matching zero rows of w2^T contribute nothing).
    """
    H, D = w1.shape
    if th is None:
        th = _tpu_defaults()[1]
    th = _round_up(min(th, _round_up(H, 128)), 128)
    Hp = _round_up(H, th)
    if dtype is not None:
        w1, w2, w3 = (w.astype(dtype) for w in (w1, w2, w3))
    w1t = jnp.pad(w1.T, ((0, 0), (0, Hp - H)))
    w3t = jnp.pad(w3.T, ((0, 0), (0, Hp - H)))
    w2tp = jnp.pad(w2.T, ((0, Hp - H), (0, 0)))
    nh = Hp // th
    w13p = jnp.concatenate(
        [w1t.reshape(D, nh, th), w3t.reshape(D, nh, th)], axis=2
    ).reshape(D, 2 * Hp)
    return w13p, w2tp, th


@functools.partial(jax.jit, static_argnames=("th", "tm"))
def feed_forward(x, w13p, w2tp, *, th, tm=None):
    """Computes w2( silu(w1(x)) * w3(x) ) with pre-packed weights.

    x: (T, D).  w13p/w2tp/th come from pack_ffn_weights.
    tm: token tile (rows); None -> per-generation default.
    """
    T, D = x.shape
    Hp, D2 = w2tp.shape
    if D2 != D or w13p.shape != (D, 2 * Hp) or Hp % th != 0:
        raise ValueError("weights not packed for this (D, th); use pack_ffn_weights")

    tm_def, _, vmem_ceiling = _tpu_defaults()
    if tm is None:
        tm = tm_def

    # Clamp + align token tile: 16 sublanes covers f32 and bf16 packing.
    tm_eff = _round_up(min(tm, _round_up(T, 16)), 16)
    # Shrink the token tile if the working set would blow the VMEM budget
    # (th is fixed by the weight packing, so only tm is adjusted).
    while (_tile_vmem_bytes(tm_eff, th, D, x.dtype, w13p.dtype) > vmem_ceiling
           and tm_eff > 16):
        tm_eff = max(16, _round_up(tm_eff // 2, 16))

    Tp = _round_up(T, tm_eff)
    if Tp != T:
        x = jnp.pad(x, ((0, Tp - T), (0, 0)))   # activations only: cheap

    grid = (Tp // tm_eff, Hp // th)

    tile_bytes = _tile_vmem_bytes(tm_eff, th, D, x.dtype, w13p.dtype)
    vmem_limit = min(max(int(tile_bytes * 1.2) + (2 << 20), 32 << 20),
                     vmem_ceiling)

    weight_bytes = _bytes(w13p.shape, w13p.dtype) + _bytes(w2tp.shape, w2tp.dtype)
    cost = pl.CostEstimate(
        flops=6 * Tp * D * Hp,                 # three T*D*H matmuls
        transcendentals=Tp * Hp,               # sigmoid in SiLU
        # The full weight set is re-streamed once per token tile.
        bytes_accessed=weight_bytes * grid[0] + 2 * _bytes((Tp, D), x.dtype),
    )

    out = pl.pallas_call(
        functools.partial(_ffn_kernel, th=th),
        out_shape=jax.ShapeDtypeStruct((Tp, D), x.dtype),
        grid_spec=pltpu.PrefetchScalarGridSpec(
            num_scalar_prefetch=0,
            grid=grid,
            in_specs=[
                pl.BlockSpec((tm_eff, D), lambda i, h: (i, 0)),     # x token tile
                pl.BlockSpec((D, 2 * th), lambda i, h: (0, h)),     # fused w1/w3 tile
                pl.BlockSpec((th, D), lambda i, h: (h, 0)),         # w2^T row tile
            ],
            out_specs=pl.BlockSpec((tm_eff, D), lambda i, h: (i, 0)),
            scratch_shapes=[pltpu.VMEM((tm_eff, D), jnp.float32)],
        ),
        compiler_params=pltpu.CompilerParams(
            dimension_semantics=("parallel", "arbitrary"),
            vmem_limit_bytes=vmem_limit,
        ),
        cost_estimate=cost,
    )(x, w13p, w2tp)
    return out[:T]


def llama_hidden_dim(dim, multiple_of, ffn_dim_multiplier=None):
    hidden_dim = 4 * dim
    hidden_dim = int(2 * hidden_dim / 3)
    if ffn_dim_multiplier is not None:
        hidden_dim = int(ffn_dim_multiplier * hidden_dim)
    hidden_dim = multiple_of * ((hidden_dim + multiple_of - 1) // multiple_of)
    return hidden_dim


if __name__ == "__main__":
    # Small, TPU-tile-friendly config (ModelArgs semantics, scaled down).
    dim = 256
    multiple_of = 256
    hidden_dim = llama_hidden_dim(dim, multiple_of)   # -> 768
    batch, seq = 2, 16                                # 32 tokens

    key = jax.random.PRNGKey(0)
    kx, k1, k2, k3 = jax.random.split(key, 4)

    x = jax.random.normal(kx, (batch, seq, dim), dtype=jnp.float32)

    # nn.Linear(in, out, bias=False).weight is (out, in): torch layout.
    w1 = jax.random.normal(k1, (hidden_dim, dim), dtype=jnp.float32) * 0.02
    w2 = jax.random.normal(k2, (dim, hidden_dim), dtype=jnp.float32) * 0.02
    w3 = jax.random.normal(k3, (hidden_dim, dim), dtype=jnp.float32) * 0.02

    x_flat = x.reshape(batch * seq, dim)

    # Pure-JAX reference.
    ref = (jax.nn.silu(x_flat @ w1.T) * (x_flat @ w3.T)) @ w2.T

    # f32 path; small tiles here just to exercise both grid axes (2 x 2 grid).
    # At real Llama shapes use the per-generation defaults (tm/th=None).
    w13p, w2tp, th = pack_ffn_weights(w1, w2, w3, th=384)
    out_f32 = feed_forward(x_flat, w13p, w2tp, th=th, tm=16)
    jax.block_until_ready(out_f32)
    assert jnp.allclose(out_f32, ref, atol=2e-3, rtol=2e-3), "f32 mismatch vs reference"

    # bf16 weights/activations (v6e / v7x deployment path), f32 accumulation.
    w13p_bf, w2tp_bf, th_bf = pack_ffn_weights(w1, w2, w3, th=384, dtype=jnp.bfloat16)
    out_bf16 = feed_forward(x_flat.astype(jnp.bfloat16), w13p_bf, w2tp_bf,
                            th=th_bf, tm=16)
    jax.block_until_ready(out_bf16)
    err = float(jnp.max(jnp.abs(out_bf16.astype(jnp.float32) - ref)))
    assert err < 5e-2, f"bf16 mismatch vs reference: {err}"

    out = out_f32.reshape(batch, seq, dim)
    jax.block_until_ready(out)
    print("KERNEL_OK")
</pallas_src>

<mosaic_0001>
module attributes {stable_mosaic.version = 11 : i64} {
  func.func @_ffn_kernel(%arg0: i32, %arg1: i32, %arg2: memref<16x256xf32, #tpu.memory_space<vmem>>, %arg3: memref<256x768xf32, #tpu.memory_space<vmem>>, %arg4: memref<384x256xf32, #tpu.memory_space<vmem>>, %arg5: memref<16x256xf32, #tpu.memory_space<vmem>>, %arg6: memref<16x256xf32, #tpu.memory_space<vmem>>) attributes {dimension_semantics = [#tpu.dimension_semantics<parallel>, #tpu.dimension_semantics<arbitrary>], iteration_bounds = array<i64: 2, 2>, scalar_prefetch = 0 : i64, scratch_operands = 1 : i64, tpu.core_type = #tpu.core_type<tc>, window_params = [{transform_indices = @transform_0, window_bounds = array<i64: 16, 256>}, {transform_indices = @transform_1, window_bounds = array<i64: 256, 768>}, {transform_indices = @transform_2, window_bounds = array<i64: 384, 256>}, {transform_indices = @transform_3, window_bounds = array<i64: 16, 256>}]} {
    %c0_i32 = arith.constant 0 : i32
    %0 = arith.cmpi eq, %arg1, %c0_i32 : i32
    %1 = arith.extui %0 : i1 to i32
    %c0_i32_0 = arith.constant 0 : i32
    %2 = arith.cmpi ne, %1, %c0_i32_0 : i32
    scf.if %2 {
      %cst_13 = arith.constant 0.000000e+00 : f32
      %23 = vector.broadcast %cst_13 : f32 to vector<16x256xf32>
      %c0_14 = arith.constant 0 : index
      %c0_15 = arith.constant 0 : index
      %24 = vector.load %arg6[%c0_14, %c0_15] : memref<16x256xf32, #tpu.memory_space<vmem>>, vector<16x256xf32>
      tpu.vector_store %arg6[%c0_14, %c0_15], %23 {strides = array<i32>} : memref<16x256xf32, #tpu.memory_space<vmem>>, vector<16x256xf32>,
    } else {
    }
    %c0 = arith.constant 0 : index
    %c0_1 = arith.constant 0 : index
    %3 = vector.load %arg2[%c0, %c0_1] : memref<16x256xf32, #tpu.memory_space<vmem>>, vector<16x256xf32>
    %c0_2 = arith.constant 0 : index
    %c0_3 = arith.constant 0 : index
    %4 = vector.load %arg3[%c0_2, %c0_3] : memref<256x768xf32, #tpu.memory_space<vmem>>, vector<256x768xf32>
    %cst = arith.constant dense<0.000000e+00> : vector<16x768xf32>
    %5 = tpu.matmul %3, %4, %cst {dimension_numbers = #tpu.dot_dimension_numbers<[1], [0], [0], [1], [0, 0, 1, 1], [], []>} : vector<16x256xf32>, vector<256x768xf32>, vector<16x768xf32> -> vector<16x768xf32>
    %6 = vector.extract_strided_slice %5 {offsets = [0, 0], sizes = [16, 384], strides = [1, 1]} : vector<16x768xf32> to vector<16x384xf32>
    %7 = vector.extract_strided_slice %5 {offsets = [0, 384], sizes = [16, 384], strides = [1, 1]} : vector<16x768xf32> to vector<16x384xf32>
    %8 = arith.negf %6 : vector<16x384xf32>
    %9 = math.exp %8 : vector<16x384xf32>
    %cst_4 = arith.constant 1.000000e+00 : f32
    %10 = vector.broadcast %cst_4 : f32 to vector<16x384xf32>
    %11 = arith.addf %10, %9 : vector<16x384xf32>
    %12 = arith.divf %10, %11 : vector<16x384xf32>
    %13 = arith.mulf %6, %12 : vector<16x384xf32>
    %14 = arith.mulf %13, %7 : vector<16x384xf32>
    %c0_5 = arith.constant 0 : index
    %c0_6 = arith.constant 0 : index
    %15 = vector.load %arg6[%c0_5, %c0_6] : memref<16x256xf32, #tpu.memory_space<vmem>>, vector<16x256xf32>
    %c0_7 = arith.constant 0 : index
    %c0_8 = arith.constant 0 : index
    %16 = vector.load %arg4[%c0_7, %c0_8] : memref<384x256xf32, #tpu.memory_space<vmem>>, vector<384x256xf32>
    %cst_9 = arith.constant dense<0.000000e+00> : vector<16x256xf32>
    %17 = tpu.matmul %14, %16, %cst_9 {dimension_numbers = #tpu.dot_dimension_numbers<[1], [0], [0], [1], [0, 0, 1, 1], [], []>} : vector<16x384xf32>, vector<384x256xf32>, vector<16x256xf32> -> vector<16x256xf32>
    %18 = arith.addf %15, %17 : vector<16x256xf32>
    %c0_10 = arith.constant 0 : index
    %c0_11 = arith.constant 0 : index
    %19 = vector.load %arg6[%c0_10, %c0_11] : memref<16x256xf32, #tpu.memory_space<vmem>>, vector<16x256xf32>
    tpu.vector_store %arg6[%c0_10, %c0_11], %18 {strides = array<i32>} : memref<16x256xf32, #tpu.memory_space<vmem>>, vector<16x256xf32>,
    %c1_i32 = arith.constant 1 : i32
    %20 = arith.cmpi eq, %arg1, %c1_i32 : i32
    %21 = arith.extui %20 : i1 to i32
    %c0_i32_12 = arith.constant 0 : i32
    %22 = arith.cmpi ne, %21, %c0_i32_12 : i32
    scf.if %22 {
      %c0_13 = arith.constant 0 : index
      %c0_14 = arith.constant 0 : index
      %23 = vector.load %arg6[%c0_13, %c0_14] : memref<16x256xf32, #tpu.memory_space<vmem>>, vector<16x256xf32>
      %c0_15 = arith.constant 0 : index
      %c0_16 = arith.constant 0 : index
      %24 = vector.load %arg5[%c0_15, %c0_16] : memref<16x256xf32, #tpu.memory_space<vmem>>, vector<16x256xf32>
      tpu.vector_store %arg5[%c0_15, %c0_16], %23 {strides = array<i32>} : memref<16x256xf32, #tpu.memory_space<vmem>>, vector<16x256xf32>,
    } else {
    }
    return
  }
  func.func @transform_0(%arg0: i32, %arg1: i32) -> (i32, i32) {
    %c0_i32 = arith.constant 0 : i32
    %c0_i32_0 = arith.constant 0 : i32
    return %arg0, %c0_i32 : i32, i32
  }
  func.func @transform_1(%arg0: i32, %arg1: i32) -> (i32, i32) {
    %c0_i32 = arith.constant 0 : i32
    %c0_i32_0 = arith.constant 0 : i32
    return %c0_i32, %arg1 : i32, i32
  }
  func.func @transform_2(%arg0: i32, %arg1: i32) -> (i32, i32) {
    %c0_i32 = arith.constant 0 : i32
    %c0_i32_0 = arith.constant 0 : i32
    return %arg1, %c0_i32 : i32, i32
  }
  func.func @transform_3(%arg0: i32, %arg1: i32) -> (i32, i32) {
    %c0_i32 = arith.constant 0 : i32
    %c0_i32_0 = arith.constant 0 : i32
    return %arg0, %c0_i32 : i32, i32
  }
}

</mosaic_0001>

<bundles_post_ra>
// kernel: feed_forward.1
= control target key start
LH: loop header
LB: loop body
LE: loop exit
PB: predicated region body
PF: predicated region fallthrough
CT: control target
= control target key end

     0   :  { %s2679_s0 = inlined_call_operand.hbm [shape: f32[32,256], index: 0, kind: input, shape index: {}]   ;;  %s2680_s1 = inlined_call_operand.hbm [shape: f32[256,1536], index: 1, kind: input, shape index: {}]   ;;  %s2681_s2 = inlined_call_operand.hbm [shape: f32[768,256], index: 2, kind: input, shape index: {}]   ;;  %s2682_s3 = inlined_call_operand.hbm [shape: f32[32,256], index: 3, kind: output, shape index: {}]  }
   0x1   :  { %2695 = sst [smem:[#allocation19_spill]] %s2679_s0 }
   0x2   :  { %2696 = sst [smem:[#allocation20_spill]] %s2680_s1 }
   0x3   :  { %2697 = sst [smem:[#allocation21_spill]] %s2682_s3 }
   0x4   :  { %8 = vsyncpa [#allocation4], 0 }
   0x5   :  { %10 = vsyncpa [#allocation4 + $0x1], 0 }
   0x6   :  { %11 = vsyncpa [#allocation7], 0 }
   0x7   :  { %13 = vsyncpa [#allocation7 + $0x1], 0 }
   0x8   :  { %14 = vsyncpa [#allocation5], 0 }
   0x9   :  { %16 = vsyncpa [#allocation5 + $0x1], 0  ;;  %s1927_s12 = smov 0   ;;  %s1929_s13 = smov 0  }
   0xa   :  { %s1931_s14 = smov 0   ;;  %s1933_s15 = smov 0  }
   0xb   :  { %s1935_s16 = smov 0   ;;  %s1937_s17 = smov 0  }
   0xc   :  { %s1939_s18 = smov 0   ;;  %s1941_s19 = smov 0  }
   0xd   :  { %s1943_s20 = smov 0   ;;  %s1945_s21 = smov 0  }
   0xe   :  { %s1947_s22 = smov 0  }
   0xf LB: > { %2698 = sst [smem:[#allocation13_spill]] %s1872_s17  ;;  %s31_s23 = sadd.s32 1, %s1884_s20  ;;  %s1892_s22 = sphi %s1947_s22, %s22_s22   ;;  %s1888_s21 = sphi %s1945_s21, %s2733_s21   ;;  %s1884_s20 = sphi %s1943_s20, %s2740_s20   ;;  %s1880_s19 = sphi %s1941_s19, %s2731_s19   ;;  %s1876_s18 = sphi %s1939_s18, %s2739_s18   ;;  %s1872_s17 = sphi %s1937_s17, %s2730_s17   ;;  %s1868_s16 = sphi %s1935_s16, %s2738_s16   ;;  %s1864_s15 = sphi %s1933_s15, %s2737_s15   ;;  %s1860_s14 = sphi %s1931_s14, %s2736_s14   ;;  %s1856_s13 = sphi %s1929_s13, %s2735_s13   ;;  %s1852_s12 = sphi %s1927_s12, %s2734_s12  }
  0x10   : > { %2699 = sst [smem:[#allocation14_spill]] %s1888_s21  ;;  %p2684_p0 = scmp.eq.s32.totalorder %s1892_s22, 0 }
  0x11   : > { %p1984_p1 = scmp.ge.s32.totalorder %s31_s23, 2  ;;  %s67_s25 = sadd.s32 1, %s1860_s14 }
  0x12   : > { %p74_p2 = scmp.ne.s32.totalorder %s1860_s14, %s1856_s13  ;;  %p2683_p5 = scmp.lt.s32.totalorder %s1892_s22, 4 }
  0x13   : > { %s2742_s23 = smov (%p1984_p1, %s31_s23), 0  ;;  %s178_s27 = sand.u32 1, %s1892_s22  }
  0x14   : > { %2701 = sst [smem:[#allocation15_spill]] %s2742_s23  ;;  %p76_p4 = por %p74_p2, %p2684_p0 }
  0x15   : > { %s64_s26 = ssub.s32 %s1884_s20, %s2742_s23  ;;  %s2685_s28 = sand.u32 1, %s1860_s14  }
  0x16   : > { %p65_p6 = scmp.eq.s32.totalorder %s64_s26, 0  ;;  %s1527_s30 = smul.u32 1536, %s2685_s28 }
  0x17   : > { %p2011_p7 = pnand %p2683_p5, %p76_p4  ;;  %s1213_s5 = smul.u32 768, %s1884_s20 }
  0x18   : > { %s2005_s29 = scalar_select %p65_p6, %s1860_s14, %s67_s25  }
  0x19   : > { %s2704_s1 = sld [smem:[#allocation20_spill]]  ;;  %s182_s9 = scalar_lea.vmem [#allocation6], %s1527_s30 }
  0x1a   : > { %2702 = sst [smem:[#allocation16_spill]] %s2005_s29  ;;  %s189_s10 = sshll.u32 %s182_s9, 4  ;;  %s2021_s10 = int_to_ptr.vmem [resolvable:$true] %s189_s10 }
  0x1b   : > { %s2024_s11 = scalar_lea.sflag [#allocation7], %s178_s27  ;;  %p2686_p10 = pneg %p2011_p7 }
  0x1f   : > { %s2019_s8 = scalar_lea.hbm %s2704_s1, %s1213_s5  ;;  %s1681_s6 = scalar_lea.hbm %s2704_s1, 49152 }
  0x20   : > { %s1676_s25 = scalar_lea.hbm %s2019_s8, 24576  ;;  %p1682_p13 = scmp.lt.u32.totalorder %s2019_s8, %s2704_s1 }
  0x21   : > { %p1677_p9 = scmp.ne.s32.totalorder %s2019_s8, %s1676_s25  ;;  %p1683_p2 = scmp.lt.u32.totalorder %s1681_s6, %s1676_s25 }
  0x22   : > { %p1685_p6 = scmp.lt.u32.totalorder %s1676_s25, %s2019_s8 }
  0x23   : > { %p1679_p11 = pnand %p2686_p10, %p1677_p9  ;;  %p1684_p4 = por %p1683_p2, %p1682_p13 }
  0x25   : > { %p1680_p12 = pneg %p1679_p11  ;;  %p1686_p5 = por %p1685_p6, %p1684_p4 }
  0x27   : > { %p1687_p3 = pnand %p1686_p5, %p1680_p12 }
  0x29   : > { %1690 = shalt.err (!%p1687_p3)
}
  0x2a   : > { %s1691_s27 = scalar_lea.vmem %s2021_s10, 24576  ;;  %s1894_s9 = smov [#allocation6]  }
  0x2b   : > { %p1692_p9 = scmp.ne.s32.totalorder %s2021_s10, %s1691_s27  ;;  %s1696_s26 = sshll.u32 %s1894_s9, 4  ;;  %s1697_s26 = int_to_ptr.vmem [resolvable:$false] %s1696_s26 }
  0x2c   : > { %s1698_s5 = scalar_lea.vmem %s1697_s26, 49152  ;;  %p1699_p8 = scmp.lt.s32.totalorder %s2021_s10, %s1697_s26 }
  0x2d   : > { %p1694_p11 = pnand %p1692_p9, %p2686_p10  ;;  %p1700_p13 = scmp.lt.s32.totalorder %s1698_s5, %s1691_s27 }
  0x2f   : > { %p1695_p0 = pneg %p1694_p11  ;;  %p1701_p2 = por %p1700_p13, %p1699_p8 }
  0x31   : > { %p1702_p4 = pnand %p1701_p2, %p1695_p0 }
  0x33   : > { %1705 = shalt.err (!%p1702_p4)
}
  0x34   : > { %s1895_s25 = smov 1536   ;;  %s1896_s6 = smov 768  }
  0x35   : > { %s1897_s7 = smov 48   ;;  %p219_p0 = scmp.lt.s32.totalorder %s1892_s22, 5 }
  0x36   : > { %1545 = dma.hbm_to_vmem [thread:$0]  (!%p2011_p7), %s2019_s8, 24576, %s2021_s10, %s2024_s11, %s1895_s25, %s1896_s6, %s1897_s7  }
  0x37   : > { %p2705_p3 = scmp.ge.s32.totalorder %s1892_s22, 1  ;;  %s2060_s27 = sadd.s32 4294967295, %s1892_s22  }
  0x38   : > { %s1184_s9 = sadd.s32 4294967294, %s1892_s22   ;;  %s34_s26 = sadd.s32 1, %s1888_s21 }
  0x39   : > { %p2055_p5 = pnand %p2705_p3, %p219_p0  ;;  %s41_s5 = sadd.s32 1, %s1872_s17 }
  0x3a   : > { %s2744_s26 = smov (!%p1984_p1, %s34_s26), %s1888_s21  ;;  %p48_p8 = scmp.ne.s32.totalorder %s1872_s17, %s1868_s16 }
  0x3b   : > { %s2706_s30 = scalar_select %p2055_p5, 1, 0 }
  0x3c   : > { %p54_p12 = scmp.ne.s32.totalorder %s1868_s16, %s1864_s15  ;;  %p36_p6 = scmp.ge.s32.totalorder %s2744_s26, 2 }
  0x3d   : > { %p55_p9 = scmp.eq.s32.totalorder %s2060_s27, 0  ;;  %p2707_p11 = scmp.eq.s32.totalorder %s1892_s22, 0 }
  0x3e   : > { %p130_p2 = scmp.eq.s32.totalorder %s2060_s27, 3  ;;  %s2746_s26 = smov (%p36_p6, %s2744_s26), 0 }
  0x3f   : > { %p2075_p13 = por %p2707_p11, %p48_p8  ;;  %2709 = sst [smem:[#allocation17_spill]] %s2746_s26 }
  0x40   : > { %p2085_p1 = por %p55_p9, %p54_p12  ;;  %p2711_p4 = scmp.ne.s32.totalorder %s1856_s13, %s1852_s12 }
  0x41   : > { %s38_s25 = ssub.s32 %s1888_s21, %s2746_s26  ;;  %p2098_p3 = por %p130_p2, %p48_p8 }
  0x42   : > { %s2710_s24 = scalar_select %p2085_p1, 1, 0 }
  0x43   : > { %p2092_p0 = por %p2711_p4, %p55_p9  ;;  %p39_p11 = scmp.eq.s32.totalorder %s38_s25, 0 }
  0x44   : > { %s2713_s6 = scalar_select %p2098_p3, 1, 0 }
  0x45   : > { %s2712_s10 = scalar_select %p2092_p0, 1, 0 }
  0x46   : > { %p136_p6 = scmp.eq.s32.totalorder %s1184_s9, 3  ;;  %s156_s7 = sand.u32 1, %s1872_s17  }
  0x47   : > { %s1212_s28 = sshll.u32 %s1888_s21, 9  ;;  %s1187_s12 = sshll.u32 %s156_s7, 5 }
  0x48   : > { %s2105_s1 = scalar_select %p39_p11, %s1872_s17, %s41_s5  }
  0x49   : > { %p2110_p10 = por %p136_p6, %p54_p12  ;;  %s2716_s0 = sld [smem:[#allocation19_spill]] }
  0x4a   : > { %2714 = sst [smem:[#allocation18_spill]] %s2105_s1  ;;  %p2717_p8 = scmp.lt.s32.totalorder %s1892_s22, 4 }
  0x4b   : > { %s2715_s23 = scalar_select %p2110_p10, 1, 0 }
  0x4c   : > { %p2123_p9 = pnand %p2717_p8, %p2075_p13  ;;  %s160_s5 = scalar_lea.vmem [#allocation3], %s1187_s12 }
  0x4d   : > { %s168_s25 = sshll.u32 %s160_s5, 4  ;;  %s2719_s21 = sand.u32 1, %s1860_s14   ;;  %s2127_s25 = int_to_ptr.vmem [resolvable:$true] %s168_s25 }
  0x4e   : > { %s2131_s3 = smul.u32 768, %s2719_s21  ;;  %p1708_p2 = pneg %p2123_p9 }
  0x4f   : > { %s2117_s26 = scalar_lea.hbm %s2716_s0, %s1212_s28  ;;  %s2133_s28 = scalar_lea.sflag [#allocation4], %s156_s7 }
  0x50   : > { %s1706_s29 = scalar_lea.hbm %s2117_s26, 512  ;;  %s1711_s12 = scalar_lea.hbm %s2716_s0, 1024 }
  0x51   : > { %p1707_p12 = scmp.ne.s32.totalorder %s2117_s26, %s1706_s29  ;;  %p1712_p11 = scmp.lt.u32.totalorder %s2117_s26, %s2716_s0 }
  0x52   : > { %p1713_p6 = scmp.lt.u32.totalorder %s1711_s12, %s1706_s29  ;;  %p1715_p10 = scmp.lt.u32.totalorder %s1706_s29, %s2117_s26 }
  0x53   : > { %p1709_p13 = pnand %p1708_p2, %p1707_p12 }
  0x54   : > { %p1714_p8 = por %p1713_p6, %p1712_p11 }
  0x55   : > { %p1710_p4 = pneg %p1709_p13 }
  0x56   : > { %p1716_p3 = por %p1715_p10, %p1714_p8 }
  0x58   : > { %p1717_p0 = pnand %p1716_p3, %p1710_p4 }
  0x5a   : > { %1720 = shalt.err (!%p1717_p0)
}
  0x5b   : > { %s1721_s21 = scalar_lea.vmem %s2127_s25, 512  ;;  %s1898_s1 = smov [#allocation3]  }
  0x5c   : > { %p1722_p12 = scmp.ne.s32.totalorder %s2127_s25, %s1721_s21  ;;  %s1726_s7 = sshll.u32 %s1898_s1, 4  ;;  %s1727_s7 = int_to_ptr.vmem [resolvable:$false] %s1726_s7 }
  0x5d   : > { %s1728_s17 = scalar_lea.vmem %s1727_s7, 1024  ;;  %p1729_p5 = scmp.lt.s32.totalorder %s2127_s25, %s1727_s7 }
  0x5e   : > { %p1724_p13 = pnand %p1722_p12, %p1708_p2  ;;  %p1730_p11 = scmp.lt.s32.totalorder %s1728_s17, %s1721_s21 }
  0x60   : > { %p1725_p1 = pneg %p1724_p13  ;;  %p1731_p6 = por %p1730_p11, %p1729_p5 }
  0x62   : > { %p1732_p10 = pnand %p1731_p6, %p1725_p1 }
  0x64   : > { %1735 = shalt.err (!%p1732_p10)
}
  0x65   : > { %s1899_s29 = smov 256   ;;  %s1900_s8 = smov 16  }
  0x66   : > { %1542 = dma.hbm_to_vmem [thread:$0]  (!%p2123_p9), %s2117_s26, 512, %s2127_s25, %s2133_s28, %s1899_s29, %s1899_s29, %s1900_s8  }
  0x67   : > { %s1218_s12 = smul.u32 12288, %s1884_s20  ;;  %s203_s5 = scalar_lea.vmem [#allocation8], %s2131_s3 }
  0x68   : > { %s211_s21 = sshll.u32 %s203_s5, 4  ;;  %p2720_p1 = pneg %p2011_p7  ;;  %s2171_s21 = int_to_ptr.vmem [resolvable:$true] %s211_s21 }
  0x69   : > { %s2169_s17 = scalar_lea.hbm %s2681_s2, %s1218_s12  ;;  %s1741_s25 = scalar_lea.hbm %s2681_s2, 24576 }
  0x6a   : > { %s1736_s0 = scalar_lea.hbm %s2169_s17, 12288  ;;  %p1742_p9 = scmp.lt.u32.totalorder %s2169_s17, %s2681_s2 }
  0x6b   : > { %p1737_p5 = scmp.ne.s32.totalorder %s2169_s17, %s1736_s0  ;;  %p1743_p2 = scmp.lt.u32.totalorder %s1741_s25, %s1736_s0 }
  0x6c   : > { %p1745_p8 = scmp.lt.u32.totalorder %s1736_s0, %s2169_s17 }
  0x6d   : > { %p1739_p0 = pnand %p1737_p5, %p2720_p1  ;;  %p1744_p4 = por %p1743_p2, %p1742_p9 }
  0x6f   : > { %p1740_p3 = pneg %p1739_p0  ;;  %p1746_p12 = por %p1745_p8, %p1744_p4 }
  0x71   : > { %p1747_p13 = pnand %p1746_p12, %p1740_p3 }
  0x73   : > { %1750 = shalt.err (!%p1747_p13)
}
  0x74   : > { %s1751_s12 = scalar_lea.vmem %s2171_s21, 12288  ;;  %p2721_p6 = pmov %p2720_p1 }
  0x75   : > { %p1752_p11 = scmp.ne.s32.totalorder %s2171_s21, %s1751_s12  ;;  %s1901_s5 = smov [#allocation8]  }
  0x76   : > { %s1756_s1 = sshll.u32 %s1901_s5, 4  ;;  %s1757_s1 = int_to_ptr.vmem [resolvable:$false] %s1756_s1 }
  0x77   : > { %p1754_p10 = pnand %p1752_p11, %p2721_p6  ;;  %s1758_s7 = scalar_lea.vmem %s1757_s1, 24576 }
  0x78   : > { %p1759_p1 = scmp.lt.s32.totalorder %s2171_s21, %s1757_s1  ;;  %p1760_p0 = scmp.lt.s32.totalorder %s1758_s7, %s1751_s12 }
  0x79   : > { %p1755_p5 = pneg %p1754_p10 }
  0x7a   : > { %p1761_p9 = por %p1760_p0, %p1759_p1 }
  0x7c   : > { %p1762_p2 = pnand %p1761_p9, %p1755_p5 }
  0x7e   : > { %1765 = shalt.err (!%p1762_p2)
}
  0x7f   : > { %1548 = dma.hbm_to_vmem [thread:$0]  (!%p2011_p7), %s2169_s17, 12288, %s2171_s21, %s2024_s11, %s1899_s29, %s1899_s29, %s1900_s8  }
  0x80   : > { %p2722_p3 = scmp.ne.s32.totalorder %s2706_s30, 0 }
  0x81   : > { %s2203_s0 = sand.u32 (!%p2722_p3), 1, %s1868_s16   ;;  %p2723_p4 = scmp.ne.s32.totalorder (!%p2722_p3), %s2710_s24, 0 }
  0x82   : > { %223 = sbr.rel (%p2722_p3) target bundleno = 782 (0x30e), region = 32  ;;  %s1195_s26 = sshll.u32 (!%p2722_p3), %s2203_s0, 5 }
  0x83   : > { %s226_s9 = scalar_lea.sflag (!%p2722_p3), [#allocation4], %s2203_s0  ;;  %s2207_s25 = scalar_lea.vmem (!%p2722_p3), [#allocation3], %s1195_s26 }
  0x89   : > { %1839 = dma.done.wait (%p2723_p4), %s226_s9, 512  }
  0x8a   : > { %1841 = vsyncadd (%p2723_p4), %s226_s9, 4294966784  ;;  %s234_s4 = sand.u32 1, %s2060_s27   ;;  %s236_s11 = sand.u32 1, %s1856_s13  }
  0x8b   : > { %s1529_s30 = smul.u32 1536, %s236_s11  ;;  %s235_s29 = scalar_lea.sflag [#allocation7], %s234_s4 }
  0x8c   : > { %p2724_p7 = scmp.ne.s32.totalorder %s2712_s10, 0 }
  0x8d   : > { %s2215_s8 = scalar_lea.vmem [#allocation6], %s1529_s30 }
  0x8e   : > { %1843 = dma.done.wait (%p2724_p7), %s235_s29, 36864  }
  0x8f   : > { %1845 = vsyncadd (%p2724_p7), %s235_s29, 4294930432  ;;  %s1530_s21 = smul.u32 768, %s236_s11  ;;  %s2223_s3 = scalar_lea.vmem [#allocation9], %s1195_s26 }
  0x90   : > { %p1197_p8 = scmp.ne.s32.totalorder %s1876_s18, 0 }
  0x91   : > { %s2221_s17 = scalar_lea.vmem [#allocation8], %s1530_s21  ;;  %v1902_v0 = vmov (!%p1197_p8), 0.0  }
  0x92   : > { %287 = sbr.rel (%p1197_p8) target bundleno = 153 (0x99), region = 48  ;;  %288 = vst [vmem:[#allocation2] sm:$0xff] (!%p1197_p8), %v1902_v0  ;;  %289 = vst [vmem:[#allocation2 + $0x8] sm:$0xff] (!%p1197_p8), %v1902_v0 }
  0x93   : > { %290 = vst [vmem:[#allocation2 + $0x10] sm:$0xff] (!%p1197_p8), %v1902_v0  ;;  %291 = vst [vmem:[#allocation2 + $0x18] sm:$0xff] (!%p1197_p8), %v1902_v0 }
  0x99 PF: > { %v297_v1 = vld [vmem:[%s2215_s8 + $0x8] sm:$0xff]  ;;  %v303_v2 = vld [vmem:[%s2215_s8 + $0x38] sm:$0xff]  ;;  %v296_v3 = vld [vmem:[%s2215_s8] sm:$0xff]  ;;  %p1204_p12 = scmp.ne.s32.totalorder %s1876_s18, 1 }
  0x9a   : > { %v1219_v4 = vpack.c.bf16 %v303_v2, %v297_v1  ;;  %v302_v5 = vld [vmem:[%s2215_s8 + $0x30] sm:$0xff]  ;;  %v309_v6 = vld [vmem:[%s2215_s8 + $0x68] sm:$0xff]  ;;  %v315_v7 = vld [vmem:[%s2215_s8 + $0x98] sm:$0xff] }
  0x9b   : > { %v1221_v8 = vpack.c.bf16 %v302_v5, %v296_v3  ;;  %v1223_v9 = vpack.c.bf16 %v315_v7, %v309_v6  ;;  %v308_v10 = vld [vmem:[%s2215_s8 + $0x60] sm:$0xff]  ;;  %v314_v11 = vld [vmem:[%s2215_s8 + $0x90] sm:$0xff]  ;;  %v321_v12 = vld [vmem:[%s2215_s8 + $0xc8] sm:$0xff] }
  0x9c   : > { %1220 = vmatprep.subr.bf16.mxu0 %v1219_v4  ;;  %v327_v13 = vld [vmem:[%s2215_s8 + $0xf8] sm:$0xff]  ;;  %v1225_v14 = vpack.c.bf16 %v314_v11, %v308_v10  ;;  %v320_v16 = vld [vmem:[%s2215_s8 + $0xc0] sm:$0xff]  ;;  %v326_v17 = vld [vmem:[%s2215_s8 + $0xf0] sm:$0xff] }
  0x9d   : > { %1222 = vmatpush1.bf16.msra.mxu0 %v1221_v8  ;;  %v1227_v15 = vpack.c.bf16 %v327_v13, %v321_v12  ;;  %v333_v18 = vld [vmem:[%s2215_s8 + $0x128] sm:$0xff]  ;;  %v339_v19 = vld [vmem:[%s2215_s8 + $0x158] sm:$0xff]  ;;  %v1229_v20 = vpack.c.bf16 %v326_v17, %v320_v16  ;;  %v332_v21 = vld [vmem:[%s2215_s8 + $0x120] sm:$0xff] }
  0x9e   : > { %1224 = vmatprep.subr.bf16.mxu0 %v1223_v9  ;;  %v1231_v22 = vpack.c.bf16 %v339_v19, %v333_v18  ;;  %v338_v23 = vld [vmem:[%s2215_s8 + $0x150] sm:$0xff]  ;;  %v299_v24 = vld [vmem:[%s2215_s8 + $0x18] sm:$0xff]  ;;  %v305_v25 = vld [vmem:[%s2215_s8 + $0x48] sm:$0xff] }
  0x9f   : > { %v345_v26 = vld [vmem:[%s2215_s8 + $0x188] sm:$0xff]  ;;  %v351_v27 = vld [vmem:[%s2215_s8 + $0x1b8] sm:$0xff]  ;;  %v1283_v28 = vpack.c.bf16 %v305_v25, %v299_v24  ;;  %v298_v29 = vld [vmem:[%s2215_s8 + $0x10] sm:$0xff]  ;;  %v1233_v31 = vpack.c.bf16 %v338_v23, %v332_v21 }
  0xa0   : > { %v304_v30 = vld [vmem:[%s2215_s8 + $0x40] sm:$0xff]  ;;  %v311_v34 = vld [vmem:[%s2215_s8 + $0x78] sm:$0xff]  ;;  %v317_v35 = vld [vmem:[%s2215_s8 + $0xa8] sm:$0xff]  ;;  %v1235_v36 = vpack.c.bf16 %v351_v27, %v345_v26 }
  0xa1   : > { %1226 = vmatpush1.bf16.msra.mxu0 %v1225_v14  ;;  %v344_v32 = vld [vmem:[%s2215_s8 + $0x180] sm:$0xff]  ;;  %1284 = vmatprep.subr.bf16.mxu1 %v1283_v28  ;;  %v1285_v33 = vpack.c.bf16 %v304_v30, %v298_v29  ;;  %v350_v37 = vld [vmem:[%s2215_s8 + $0x1b0] sm:$0xff]  ;;  %v1287_v38 = vpack.c.bf16 %v317_v35, %v311_v34  ;;  %v357_v41 = vld [vmem:[%s2215_s8 + $0x1e8] sm:$0xff] }
  0xa2   : > { %1228 = vmatprep.subr.bf16.mxu0 %v1227_v15  ;;  %v310_v39 = vld [vmem:[%s2215_s8 + $0x70] sm:$0xff]  ;;  %v316_v40 = vld [vmem:[%s2215_s8 + $0xa0] sm:$0xff]  ;;  %v363_v42 = vld [vmem:[%s2215_s8 + $0x218] sm:$0xff]  ;;  %v1237_v46 = vpack.c.bf16 %v350_v37, %v344_v32 }
  0xa3   : > { %1286 = vmatpush1.bf16.msra.mxu1 %v1285_v33  ;;  %v1289_v43 = vpack.c.bf16 %v316_v40, %v310_v39  ;;  %v323_v44 = vld [vmem:[%s2215_s8 + $0xd8] sm:$0xff]  ;;  %v329_v45 = vld [vmem:[%s2215_s8 + $0x108] sm:$0xff]  ;;  %v356_v47 = vld [vmem:[%s2215_s8 + $0x1e0] sm:$0xff]  ;;  %v1239_v51 = vpack.c.bf16 %v363_v42, %v357_v41 }
  0xa4   : > { %1288 = vmatprep.subr.bf16.mxu1 %v1287_v38  ;;  %v1291_v48 = vpack.c.bf16 %v329_v45, %v323_v44  ;;  %v322_v49 = vld [vmem:[%s2215_s8 + $0xd0] sm:$0xff]  ;;  %v328_v50 = vld [vmem:[%s2215_s8 + $0x100] sm:$0xff]  ;;  %v335_v53 = vld [vmem:[%s2215_s8 + $0x138] sm:$0xff] }
  0xa5   : > { %1230 = vmatpush1.bf16.msra.mxu0 %v1229_v20  ;;  %v362_v52 = vld [vmem:[%s2215_s8 + $0x210] sm:$0xff]  ;;  %v341_v54 = vld [vmem:[%s2215_s8 + $0x168] sm:$0xff]  ;;  %v375_v56 = vld [vmem:[%s2215_s8 + $0x278] sm:$0xff]  ;;  %v1293_v57 = vpack.c.bf16 %v328_v50, %v322_v49 }
  0xa6   : > { %1232 = vmatprep.subr.bf16.mxu0 %v1231_v22  ;;  %v369_v55 = vld [vmem:[%s2215_s8 + $0x248] sm:$0xff]  ;;  %v1295_v58 = vpack.c.bf16 %v341_v54, %v335_v53  ;;  %v334_v59 = vld [vmem:[%s2215_s8 + $0x130] sm:$0xff]  ;;  %v340_v60 = vld [vmem:[%s2215_s8 + $0x160] sm:$0xff]  ;;  %v1241_v61 = vpack.c.bf16 %v362_v52, %v356_v47 }
  0xa7   : > { %1290 = vmatpush1.bf16.msra.mxu1 %v1289_v43  ;;  %v347_v62 = vld [vmem:[%s2215_s8 + $0x198] sm:$0xff]  ;;  %v353_v63 = vld [vmem:[%s2215_s8 + $0x1c8] sm:$0xff]  ;;  %v1243_v0 = vpack.c.bf16 %v375_v56, %v369_v55  ;;  %v368_v1 = vld [vmem:[%s2215_s8 + $0x240] sm:$0xff]  ;;  %v1297_v5 = vpack.c.bf16 %v340_v60, %v334_v59 }
  0xa8   : > { %1292 = vmatprep.subr.bf16.mxu1 %v1291_v48  ;;  %v374_v2 = vld [vmem:[%s2215_s8 + $0x270] sm:$0xff]  ;;  %v381_v3 = vld [vmem:[%s2215_s8 + $0x2a8] sm:$0xff]  ;;  %v387_v4 = vld [vmem:[%s2215_s8 + $0x2d8] sm:$0xff]  ;;  %v1299_v6 = vpack.c.bf16 %v353_v63, %v347_v62 }
  0xa9   : > { %1234 = vmatpush1.bf16.msra.mxu0 %v1233_v31  ;;  %v346_v7 = vld [vmem:[%s2215_s8 + $0x190] sm:$0xff]  ;;  %v352_v8 = vld [vmem:[%s2215_s8 + $0x1c0] sm:$0xff]  ;;  %v1245_v9 = vpack.c.bf16 %v374_v2, %v368_v1  ;;  %v359_v10 = vld [vmem:[%s2215_s8 + $0x1f8] sm:$0xff]  ;;  %v1247_v12 = vpack.c.bf16 %v387_v4, %v381_v3 }
  0xaa   : > { %1236 = vmatprep.subr.bf16.mxu0 %v1235_v36  ;;  %v365_v11 = vld [vmem:[%s2215_s8 + $0x228] sm:$0xff]  ;;  %v380_v13 = vld [vmem:[%s2215_s8 + $0x2a0] sm:$0xff]  ;;  %v386_v14 = vld [vmem:[%s2215_s8 + $0x2d0] sm:$0xff]  ;;  %v1301_v17 = vpack.c.bf16 %v352_v8, %v346_v7 }
  0xab   : > { %1294 = vmatpush1.bf16.msra.mxu1 %v1293_v57  ;;  %v393_v15 = vld [vmem:[%s2215_s8 + $0x308] sm:$0xff]  ;;  %v399_v16 = vld [vmem:[%s2215_s8 + $0x338] sm:$0xff]  ;;  %v1303_v18 = vpack.c.bf16 %v365_v11, %v359_v10  ;;  %v358_v19 = vld [vmem:[%s2215_s8 + $0x1f0] sm:$0xff]  ;;  %v1249_v21 = vpack.c.bf16 %v386_v14, %v380_v13 }
  0xac   : > { %1296 = vmatprep.subr.bf16.mxu1 %v1295_v58  ;;  %v364_v20 = vld [vmem:[%s2215_s8 + $0x220] sm:$0xff]  ;;  %v371_v22 = vld [vmem:[%s2215_s8 + $0x258] sm:$0xff]  ;;  %v377_v23 = vld [vmem:[%s2215_s8 + $0x288] sm:$0xff]  ;;  %v1251_v24 = vpack.c.bf16 %v399_v16, %v393_v15 }
  0xad   : > { %1238 = vmatpush1.bf16.msra.mxu0 %v1237_v46  ;;  %v392_v25 = vld [vmem:[%s2215_s8 + $0x300] sm:$0xff]  ;;  %v398_v26 = vld [vmem:[%s2215_s8 + $0x330] sm:$0xff]  ;;  %v405_v27 = vld [vmem:[%s2215_s8 + $0x368] sm:$0xff]  ;;  %v1305_v29 = vpack.c.bf16 %v364_v20, %v358_v19  ;;  %v1307_v30 = vpack.c.bf16 %v377_v23, %v371_v22 }
  0xae   : > { %1240 = vmatprep.subr.bf16.mxu0 %v1239_v51  ;;  %v411_v28 = vld [vmem:[%s2215_s8 + $0x398] sm:$0xff]  ;;  %v370_v31 = vld [vmem:[%s2215_s8 + $0x250] sm:$0xff]  ;;  %v376_v32 = vld [vmem:[%s2215_s8 + $0x280] sm:$0xff]  ;;  %v1253_v33 = vpack.c.bf16 %v398_v26, %v392_v25 }
  0xaf   : > { %1298 = vmatpush1.bf16.msra.mxu1 %v1297_v5  ;;  %v383_v34 = vld [vmem:[%s2215_s8 + $0x2b8] sm:$0xff]  ;;  %v389_v35 = vld [vmem:[%s2215_s8 + $0x2e8] sm:$0xff]  ;;  %v1255_v36 = vpack.c.bf16 %v411_v28, %v405_v27  ;;  %v404_v37 = vld [vmem:[%s2215_s8 + $0x360] sm:$0xff]  ;;  %v1309_v42 = vpack.c.bf16 %v376_v32, %v370_v31 }
  0xb0   : > { %1300 = vmatprep.subr.bf16.mxu1 %v1299_v6  ;;  %v410_v38 = vld [vmem:[%s2215_s8 + $0x390] sm:$0xff]  ;;  %v2297_v39 = vld [vmem:[%s2207_s25 + $0x8] sm:$0xff]  ;;  %v423_v41 = vld [vmem:[%s2215_s8 + $0x3f8] sm:$0xff]  ;;  %v1311_v43 = vpack.c.bf16 %v389_v35, %v383_v34 }
  0xb1   : > { %1242 = vmatpush1.bf16.msra.mxu0 %v1241_v61  ;;  %v417_v40 = vld [vmem:[%s2215_s8 + $0x3c8] sm:$0xff]  ;;  %552 = vmatprep.mubr.f32.mxu0 %v2297_v39  ;;  %v382_v44 = vld [vmem:[%s2215_s8 + $0x2b0] sm:$0xff]  ;;  %v388_v45 = vld [vmem:[%s2215_s8 + $0x2e0] sm:$0xff]  ;;  %v1257_v46 = vpack.c.bf16 %v410_v38, %v404_v37 }
  0xb2   : > { %1244 = vmatprep.subr.bf16.mxu0 %v1243_v0  ;;  %629 = vmatprep.mubr.f32.mxu1 %v2297_v39  ;;  %v395_v47 = vld [vmem:[%s2215_s8 + $0x318] sm:$0xff]  ;;  %v401_v48 = vld [vmem:[%s2215_s8 + $0x348] sm:$0xff]  ;;  %v1259_v49 = vpack.c.bf16 %v423_v41, %v417_v40  ;;  %v416_v50 = vld [vmem:[%s2215_s8 + $0x3c0] sm:$0xff]  ;;  %v1313_v54 = vpack.c.bf16 %v388_v45, %v382_v44 }
  0xb3   : > { %1302 = vmatpush1.bf16.msra.mxu1 %v1301_v17  ;;  %v422_v51 = vld [vmem:[%s2215_s8 + $0x3f0] sm:$0xff]  ;;  %v429_v52 = vld [vmem:[%s2215_s8 + $0x428] sm:$0xff]  ;;  %v435_v53 = vld [vmem:[%s2215_s8 + $0x458] sm:$0xff]  ;;  %v1315_v55 = vpack.c.bf16 %v401_v48, %v395_v47 }
  0xb4   : > { %1304 = vmatprep.subr.bf16.mxu1 %v1303_v18  ;;  %v394_v56 = vld [vmem:[%s2215_s8 + $0x310] sm:$0xff]  ;;  %v400_v57 = vld [vmem:[%s2215_s8 + $0x340] sm:$0xff]  ;;  %v1261_v58 = vpack.c.bf16 %v422_v51, %v416_v50  ;;  %v407_v59 = vld [vmem:[%s2215_s8 + $0x378] sm:$0xff]  ;;  %v1263_v61 = vpack.c.bf16 %v435_v53, %v429_v52 }
  0xb5   : > { %1246 = vmatpush1.bf16.msra.mxu0 %v1245_v9  ;;  %v413_v60 = vld [vmem:[%s2215_s8 + $0x3a8] sm:$0xff]  ;;  %v428_v62 = vld [vmem:[%s2215_s8 + $0x420] sm:$0xff]  ;;  %v434_v63 = vld [vmem:[%s2215_s8 + $0x450] sm:$0xff]  ;;  %v1317_v2 = vpack.c.bf16 %v400_v57, %v394_v56 }
  0xb6   : > { %1248 = vmatprep.subr.bf16.mxu0 %v1247_v12  ;;  %v441_v0 = vld [vmem:[%s2215_s8 + $0x488] sm:$0xff]  ;;  %v447_v1 = vld [vmem:[%s2215_s8 + $0x4b8] sm:$0xff]  ;;  %v1319_v3 = vpack.c.bf16 %v413_v60, %v407_v59  ;;  %v406_v4 = vld [vmem:[%s2215_s8 + $0x370] sm:$0xff]  ;;  %v1265_v6 = vpack.c.bf16 %v434_v63, %v428_v62 }
  0xb7   : > { %1306 = vmatpush1.bf16.msra.mxu1 %v1305_v29  ;;  %v412_v5 = vld [vmem:[%s2215_s8 + $0x3a0] sm:$0xff]  ;;  %v419_v7 = vld [vmem:[%s2215_s8 + $0x3d8] sm:$0xff]  ;;  %v425_v8 = vld [vmem:[%s2215_s8 + $0x408] sm:$0xff]  ;;  %v1267_v9 = vpack.c.bf16 %v447_v1, %v441_v0 }
  0xb8   : > { %1308 = vmatprep.subr.bf16.mxu1 %v1307_v30  ;;  %v440_v10 = vld [vmem:[%s2215_s8 + $0x480] sm:$0xff]  ;;  %v446_v11 = vld [vmem:[%s2215_s8 + $0x4b0] sm:$0xff]  ;;  %v453_v12 = vld [vmem:[%s2215_s8 + $0x4e8] sm:$0xff]  ;;  %v1321_v14 = vpack.c.bf16 %v412_v5, %v406_v4  ;;  %v1323_v15 = vpack.c.bf16 %v425_v8, %v419_v7 }
  0xb9   : > { %1250 = vmatpush1.bf16.msra.mxu0 %v1249_v21  ;;  %v459_v13 = vld [vmem:[%s2215_s8 + $0x518] sm:$0xff]  ;;  %v418_v16 = vld [vmem:[%s2215_s8 + $0x3d0] sm:$0xff]  ;;  %v424_v17 = vld [vmem:[%s2215_s8 + $0x400] sm:$0xff]  ;;  %v1269_v18 = vpack.c.bf16 %v446_v11, %v440_v10 }
  0xba   : > { %1252 = vmatprep.subr.bf16.mxu0 %v1251_v24  ;;  %v431_v19 = vld [vmem:[%s2215_s8 + $0x438] sm:$0xff]  ;;  %v437_v20 = vld [vmem:[%s2215_s8 + $0x468] sm:$0xff]  ;;  %v1271_v21 = vpack.c.bf16 %v459_v13, %v453_v12  ;;  %v452_v22 = vld [vmem:[%s2215_s8 + $0x4e0] sm:$0xff]  ;;  %v1325_v26 = vpack.c.bf16 %v424_v17, %v418_v16 }
  0xbb   : > { %1310 = vmatpush1.bf16.msra.mxu1 %v1309_v42  ;;  %v458_v23 = vld [vmem:[%s2215_s8 + $0x510] sm:$0xff]  ;;  %v465_v24 = vld [vmem:[%s2215_s8 + $0x548] sm:$0xff]  ;;  %v471_v25 = vld [vmem:[%s2215_s8 + $0x578] sm:$0xff]  ;;  %v1327_v27 = vpack.c.bf16 %v437_v20, %v431_v19 }
  0xbc   : > { %1312 = vmatprep.subr.bf16.mxu1 %v1311_v43  ;;  %v430_v28 = vld [vmem:[%s2215_s8 + $0x430] sm:$0xff]  ;;  %v436_v29 = vld [vmem:[%s2215_s8 + $0x460] sm:$0xff]  ;;  %v1273_v30 = vpack.c.bf16 %v458_v23, %v452_v22  ;;  %v443_v31 = vld [vmem:[%s2215_s8 + $0x498] sm:$0xff] }
  0xbd   : > { %1254 = vmatpush1.bf16.msra.mxu0 %v1253_v33  ;;  %v449_v32 = vld [vmem:[%s2215_s8 + $0x4c8] sm:$0xff]  ;;  %v1275_v33 = vpack.c.bf16 %v471_v25, %v465_v24  ;;  %v464_v34 = vld [vmem:[%s2215_s8 + $0x540] sm:$0xff]  ;;  %v470_v35 = vld [vmem:[%s2215_s8 + $0x570] sm:$0xff]  ;;  %v1329_v38 = vpack.c.bf16 %v436_v29, %v430_v28 }
  0xbe   : > { %1256 = vmatprep.subr.bf16.mxu0 %v1255_v36  ;;  %v477_v36 = vld [vmem:[%s2215_s8 + $0x5a8] sm:$0xff]  ;;  %v483_v37 = vld [vmem:[%s2215_s8 + $0x5d8] sm:$0xff]  ;;  %v1331_v40 = vpack.c.bf16 %v449_v32, %v443_v31  ;;  %v442_v41 = vld [vmem:[%s2215_s8 + $0x490] sm:$0xff]  ;;  %v1277_v43 = vpack.c.bf16 %v470_v35, %v464_v34 }
  0xbf   : > { %1314 = vmatpush1.bf16.msra.mxu1 %v1313_v54  ;;  %v448_v42 = vld [vmem:[%s2215_s8 + $0x4c0] sm:$0xff]  ;;  %v455_v44 = vld [vmem:[%s2215_s8 + $0x4f8] sm:$0xff]  ;;  %v461_v45 = vld [vmem:[%s2215_s8 + $0x528] sm:$0xff] }
  0xc0   : > { %1316 = vmatprep.subr.bf16.mxu1 %v1315_v55  ;;  %v476_v47 = vld [vmem:[%s2215_s8 + $0x5a0] sm:$0xff]  ;;  %v482_v48 = vld [vmem:[%s2215_s8 + $0x5d0] sm:$0xff]  ;;  %v307_v50 = vld [vmem:[%s2215_s8 + $0x58] sm:$0xff]  ;;  %v1333_v51 = vpack.c.bf16 %v448_v42, %v442_v41  ;;  %v1335_v52 = vpack.c.bf16 %v461_v45, %v455_v44 }
  0xc1   : > { %1258 = vmatpush1.bf16.msra.mxu0 %v1257_v46  ;;  %v1279_v46 = vpack.c.bf16 %v483_v37, %v477_v36  ;;  %v454_v53 = vld [vmem:[%s2215_s8 + $0x4f0] sm:$0xff]  ;;  %v460_v54 = vld [vmem:[%s2215_s8 + $0x520] sm:$0xff]  ;;  %v1281_v55 = vpack.c.bf16 %v482_v48, %v476_v47  ;;  %v467_v56 = vld [vmem:[%s2215_s8 + $0x558] sm:$0xff] }
  0xc2   : > { %1260 = vmatprep.subr.bf16.mxu0 %v1259_v49  ;;  %v301_v49 = vld [vmem:[%s2215_s8 + $0x28] sm:$0xff]  ;;  %v300_v59 = vld [vmem:[%s2215_s8 + $0x20] sm:$0xff]  ;;  %v306_v60 = vld [vmem:[%s2215_s8 + $0x50] sm:$0xff]  ;;  %v1337_v63 = vpack.c.bf16 %v460_v54, %v454_v53 }
  0xc3   : > { %1318 = vmatpush1.bf16.msra.mxu1 %v1317_v2  ;;  %v473_v57 = vld [vmem:[%s2215_s8 + $0x588] sm:$0xff]  ;;  %v319_v62 = vld [vmem:[%s2215_s8 + $0xb8] sm:$0xff]  ;;  %v466_v1 = vld [vmem:[%s2215_s8 + $0x550] sm:$0xff]  ;;  %v1349_v4 = vpack.c.bf16 %v306_v60, %v300_v59 }
  0xc4   : > { %1320 = vmatprep.subr.bf16.mxu1 %v1319_v3  ;;  %v1339_v0 = vpack.c.bf16 %v473_v57, %v467_v56  ;;  %v472_v2 = vld [vmem:[%s2215_s8 + $0x580] sm:$0xff]  ;;  %v479_v5 = vld [vmem:[%s2215_s8 + $0x5b8] sm:$0xff]  ;;  %v325_v11 = vld [vmem:[%s2215_s8 + $0xe8] sm:$0xff] }
  0xc5   : > { %1262 = vmatpush1.bf16.msra.mxu0 %v1261_v58  ;;  %v1347_v58 = vpack.c.bf16 %v307_v50, %v301_v49  ;;  %v2362_v3 = vld [vmem:[%s2207_s25] sm:$0xff]  ;;  %v2369_v10 = vld [vmem:[%s2207_s25 + $0x18] sm:$0xff]  ;;  %v1341_v13 = vpack.c.bf16 %v472_v2, %v466_v1  ;;  %v337_v22 = vld [vmem:[%s2215_s8 + $0x148] sm:$0xff] }
  0xc6   : > { %1264 = vmatprep.subr.bf16.mxu0 %v1263_v61  ;;  %v313_v61 = vld [vmem:[%s2215_s8 + $0x88] sm:$0xff]  ;;  %v312_v8 = vld [vmem:[%s2215_s8 + $0x80] sm:$0xff]  ;;  %v331_v12 = vld [vmem:[%s2215_s8 + $0x118] sm:$0xff] }
  0xc7   : > { %1322 = vmatpush1.bf16.msra.mxu1 %v1321_v14  ;;  %v1351_v7 = vpack.c.bf16 %v319_v62, %v313_v61  ;;  %v484_v16 = vld [vmem:[%s2215_s8 + $0x5e0] sm:$0xff]  ;;  %v1355_v19 = vpack.c.bf16 %v331_v12, %v325_v11  ;;  %v343_v23 = vld [vmem:[%s2215_s8 + $0x178] sm:$0xff]  ;;  %v342_v28 = vld [vmem:[%s2215_s8 + $0x170] sm:$0xff] }
  0xc8   : > { %1324 = vmatprep.subr.bf16.mxu1 %v1323_v15  ;;  %v478_v15 = vld [vmem:[%s2215_s8 + $0x5b0] sm:$0xff]  ;;  %v324_v20 = vld [vmem:[%s2215_s8 + $0xe0] sm:$0xff]  ;;  %v349_v29 = vld [vmem:[%s2215_s8 + $0x1a8] sm:$0xff] }
  0xc9   : > { %1266 = vmatpush1.bf16.msra.mxu0 %v1265_v6  ;;  %v485_v6 = vld [vmem:[%s2215_s8 + $0x5e8] sm:$0xff]  ;;  %v1345_v24 = vpack.c.bf16 %v484_v16, %v478_v15  ;;  %v354_v34 = vld [vmem:[%s2215_s8 + $0x1d0] sm:$0xff]  ;;  %v367_v35 = vld [vmem:[%s2215_s8 + $0x238] sm:$0xff] }
  0xca   : > { %1268 = vmatprep.subr.bf16.mxu0 %v1267_v9  ;;  %v318_v9 = vld [vmem:[%s2215_s8 + $0xb0] sm:$0xff]  ;;  %v1343_v14 = vpack.c.bf16 %v485_v6, %v479_v5  ;;  %v373_v41 = vld [vmem:[%s2215_s8 + $0x268] sm:$0xff]  ;;  %v379_v42 = vld [vmem:[%s2215_s8 + $0x298] sm:$0xff] }
  0xcb   : > { %1326 = vmatpush1.bf16.msra.mxu1 %v1325_v26  ;;  %v1353_v17 = vpack.c.bf16 %v318_v9, %v312_v8  ;;  %v1359_v26 = vpack.c.bf16 %v343_v23, %v337_v22  ;;  %v1371_v44 = vpack.c.bf16 %v379_v42, %v373_v41  ;;  %v372_v45 = vld [vmem:[%s2215_s8 + $0x260] sm:$0xff]  ;;  %v385_v47 = vld [vmem:[%s2215_s8 + $0x2c8] sm:$0xff]  ;;  %v391_v48 = vld [vmem:[%s2215_s8 + $0x2f8] sm:$0xff] }
  0xcc   : > { %1328 = vmatprep.subr.bf16.mxu1 %v1327_v27  ;;  %v336_v27 = vld [vmem:[%s2215_s8 + $0x140] sm:$0xff]  ;;  %v1375_v50 = vpack.c.bf16 %v391_v48, %v385_v47  ;;  %v397_v53 = vld [vmem:[%s2215_s8 + $0x328] sm:$0xff]  ;;  %v403_v54 = vld [vmem:[%s2215_s8 + $0x358] sm:$0xff] }
  0xcd   : > { %1270 = vmatpush1.bf16.msra.mxu0 %v1269_v18  ;;  %v2378_v18 = vld [vmem:[%s2207_s25 + $0x10] sm:$0xff]  ;;  %v1361_v31 = vpack.c.bf16 %v342_v28, %v336_v27  ;;  %v1379_v56 = vpack.c.bf16 %v403_v54, %v397_v53  ;;  %v396_v57 = vld [vmem:[%s2215_s8 + $0x320] sm:$0xff]  ;;  %v409_v59 = vld [vmem:[%s2215_s8 + $0x388] sm:$0xff] }
  0xce   : > { %1272 = vmatprep.subr.bf16.mxu0 %v1271_v21  ;;  %v330_v21 = vld [vmem:[%s2215_s8 + $0x110] sm:$0xff]  ;;  %v415_v60 = vld [vmem:[%s2215_s8 + $0x3b8] sm:$0xff]  ;;  %v421_v1 = vld [vmem:[%s2215_s8 + $0x3e8] sm:$0xff] }
  0xcf   : > { %1330 = vmatpush1.bf16.msra.mxu1 %v1329_v38  ;;  %v1357_v25 = vpack.c.bf16 %v330_v21, %v324_v20  ;;  %v360_v38 = vld [vmem:[%s2215_s8 + $0x200] sm:$0xff]  ;;  %v1383_v62 = vpack.c.bf16 %v415_v60, %v409_v59  ;;  %v427_v2 = vld [vmem:[%s2215_s8 + $0x418] sm:$0xff]  ;;  %v433_v8 = vld [vmem:[%s2215_s8 + $0x448] sm:$0xff] }
  0xd0   : > { %1332 = vmatprep.subr.bf16.mxu1 %v1331_v40  ;;  %v366_v40 = vld [vmem:[%s2215_s8 + $0x230] sm:$0xff]  ;;  %v1387_v5 = vpack.c.bf16 %v427_v2, %v421_v1  ;;  %v420_v6 = vld [vmem:[%s2215_s8 + $0x3e0] sm:$0xff]  ;;  %v439_v9 = vld [vmem:[%s2215_s8 + $0x478] sm:$0xff] }
  0xd1   : > { %1274 = vmatpush1.bf16.msra.mxu0 %v1273_v30  ;;  %v355_v30 = vld [vmem:[%s2215_s8 + $0x1d8] sm:$0xff]  ;;  %v1391_v12 = vpack.c.bf16 %v439_v9, %v433_v8  ;;  %v445_v15 = vld [vmem:[%s2215_s8 + $0x4a8] sm:$0xff]  ;;  %v444_v20 = vld [vmem:[%s2215_s8 + $0x4a0] sm:$0xff] }
  0xd2   : > { %1276 = vmatprep.subr.bf16.mxu0 %v1275_v33  ;;  %v1363_v32 = vpack.c.bf16 %v355_v30, %v349_v29  ;;  %v348_v33 = vld [vmem:[%s2215_s8 + $0x1a0] sm:$0xff]  ;;  %v451_v16 = vld [vmem:[%s2215_s8 + $0x4d8] sm:$0xff]  ;;  %v450_v21 = vld [vmem:[%s2215_s8 + $0x4d0] sm:$0xff] }
  0xd3   : > { %1334 = vmatpush1.bf16.msra.mxu1 %v1333_v51  ;;  %v1365_v36 = vpack.c.bf16 %v354_v34, %v348_v33  ;;  %v384_v51 = vld [vmem:[%s2215_s8 + $0x2c0] sm:$0xff]  ;;  %v457_v22 = vld [vmem:[%s2215_s8 + $0x508] sm:$0xff]  ;;  %v463_v23 = vld [vmem:[%s2215_s8 + $0x538] sm:$0xff] }
  0xd4   : > { %1336 = vmatprep.subr.bf16.mxu1 %v1335_v52  ;;  %v390_v52 = vld [vmem:[%s2215_s8 + $0x2f0] sm:$0xff]  ;;  %v469_v28 = vld [vmem:[%s2215_s8 + $0x568] sm:$0xff]  ;;  %v475_v29 = vld [vmem:[%s2215_s8 + $0x598] sm:$0xff] }
  0xd5   : > { %1278 = vmatpush1.bf16.msra.mxu0 %v1277_v43  ;;  %v1369_v43 = vpack.c.bf16 %v366_v40, %v360_v38  ;;  %v462_v27 = vld [vmem:[%s2215_s8 + $0x530] sm:$0xff]  ;;  %v481_v34 = vld [vmem:[%s2215_s8 + $0x5c8] sm:$0xff]  ;;  %v774_v42 = vld [vmem:[%s2221_s17 + $0x18] sm:$0xff] }
  0xd6   : > { %1280 = vmatprep.subr.bf16.mxu0 %v1279_v46  ;;  %v378_v46 = vld [vmem:[%s2215_s8 + $0x290] sm:$0xff]  ;;  %v772_v41 = vld [vmem:[%s2221_s17 + $0x8] sm:$0xff]  ;;  %v778_v48 = vld [vmem:[%s2221_s17 + $0x38] sm:$0xff] }
  0xd7   : > { %1338 = vmatpush1.bf16.msra.mxu1 %v1337_v63  ;;  %v1373_v49 = vpack.c.bf16 %v378_v46, %v372_v45  ;;  %v408_v63 = vld [vmem:[%s2215_s8 + $0x380] sm:$0xff]  ;;  %v474_v33 = vld [vmem:[%s2215_s8 + $0x590] sm:$0xff]  ;;  %v776_v47 = vld [vmem:[%s2221_s17 + $0x28] sm:$0xff] }
  0xd8   : > { %1340 = vmatprep.subr.bf16.mxu1 %v1339_v0  ;;  %v414_v0 = vld [vmem:[%s2215_s8 + $0x3b0] sm:$0xff]  ;;  %v779_v53 = vld [vmem:[%s2221_s17 + $0x40] sm:$0xff] }
  0xd9   : > { %1282 = vmatpush1.bf16.msra.mxu0 %v1281_v55  ;;  %v1377_v55 = vpack.c.bf16 %v390_v52, %v384_v51  ;;  %v486_v38 = vld [vmem:[%s2215_s8 + $0x5f0] sm:$0xff]  ;;  %v782_v51 = vld [vmem:[%s2221_s17 + $0x58] sm:$0xff]  ;;  %v783_v59 = vld [vmem:[%s2221_s17 + $0x60] sm:$0xff] }
  0xda   : > { %1348 = vmatprep.subr.bf16.mxu0 %v1347_v58  ;;  %v402_v58 = vld [vmem:[%s2215_s8 + $0x350] sm:$0xff]  ;;  %v787_v1 = vld [vmem:[%s2221_s17 + $0x80] sm:$0xff] }
  0xdb   : > { %1342 = vmatpush1.bf16.msra.mxu1 %v1341_v13  ;;  %v1381_v61 = vpack.c.bf16 %v402_v58, %v396_v57  ;;  %v432_v13 = vld [vmem:[%s2215_s8 + $0x440] sm:$0xff]  ;;  %v773_v45 = vld [vmem:[%s2221_s17 + $0x10] sm:$0xff]  ;;  %v786_v57 = vld [vmem:[%s2221_s17 + $0x78] sm:$0xff] }
  0xdc   : > { %553 = vmatmul.mubr.f32.vlgmr.msra.gmra.mrb[0].mxu0 %v2362_v3  ;;  %1344 = vmatprep.subr.bf16.mxu1 %v1343_v14  ;;  %v438_v14 = vld [vmem:[%s2215_s8 + $0x470] sm:$0xff]  ;;  %v791_v8 = vld [vmem:[%s2221_s17 + $0xa0] sm:$0xff] }
  0xdd   : > { %1350 = vmatpush1.bf16.msra.mxu0 %v1349_v4  ;;  %558 = vmatprep.mubr.f32.mxu0 %v2369_v10  ;;  %v1385_v4 = vpack.c.bf16 %v414_v0, %v408_v63  ;;  %v781_v54 = vld [vmem:[%s2221_s17 + $0x50] sm:$0xff]  ;;  %v790_v63 = vld [vmem:[%s2221_s17 + $0x98] sm:$0xff] }
  0xde   : > { %1352 = vmatprep.subr.bf16.mxu0 %v1351_v7  ;;  %v426_v7 = vld [vmem:[%s2215_s8 + $0x410] sm:$0xff] }
  0xdf   : > { %1346 = vmatpush1.bf16.msra.mxu1 %v1345_v24  ;;  %v1389_v11 = vpack.c.bf16 %v426_v7, %v420_v6  ;;  %v1397_v24 = vpack.c.bf16 %v450_v21, %v444_v20  ;;  %v785_v60 = vld [vmem:[%s2221_s17 + $0x70] sm:$0xff]  ;;  %v794_v6 = vld [vmem:[%s2221_s17 + $0xb8] sm:$0xff] }
  0xe0   : > { %559 = vmatmul.mubr.f32.gmra.mrb[2].mxu0 %v2378_v18  ;;  %v789_v2 = vld [vmem:[%s2221_s17 + $0x90] sm:$0xff]  ;;  %v802_v20 = vld [vmem:[%s2221_s17 + $0xf8] sm:$0xff] }
  0xe1   : > { %1354 = vmatpush1.bf16.msra.mxu0 %v1353_v17  ;;  %706 = vmatprep.mubr.f32.mxu0 %v2297_v39  ;;  %v361_v39 = vld [vmem:[%s2215_s8 + $0x208] sm:$0xff]  ;;  %v1393_v17 = vpack.c.bf16 %v438_v14, %v432_v13  ;;  %v793_v9 = vld [vmem:[%s2221_s17 + $0xb0] sm:$0xff]  ;;  %v798_v13 = vld [vmem:[%s2221_s17 + $0xd8] sm:$0xff] }
  0xe2   : > { %1356 = vmatprep.subr.bf16.mxu0 %v1355_v19  ;;  %630 = vmatmul.mubr.f32.vlgmr.msra.gmra.mrb[0].mxu1 %v2362_v3  ;;  %v1367_v37 = vpack.c.bf16 %v367_v35, %v361_v39  ;;  %v1395_v19 = vpack.c.bf16 %v451_v16, %v445_v15  ;;  %v487_v39 = vld [vmem:[%s2215_s8 + $0x5f8] sm:$0xff]  ;;  %v795_v15 = vld [vmem:[%s2221_s17 + $0xc0] sm:$0xff]  ;;  %v797_v16 = vld [vmem:[%s2221_s17 + $0xd0] sm:$0xff] }
  0xe3   : > { %635 = vmatprep.mubr.f32.mxu1 %v2369_v10 }
  0xe5   : > { %1358 = vmatpush1.bf16.msra.mxu0 %v1357_v25  ;;  %v1399_v25 = vpack.c.bf16 %v463_v23, %v457_v22  ;;  %v799_v22 = vld [vmem:[%s2221_s17 + $0xe0] sm:$0xff]  ;;  %v801_v23 = vld [vmem:[%s2221_s17 + $0xf0] sm:$0xff] }
  0xe6   : > { %1360 = vmatprep.subr.bf16.mxu0 %v1359_v26  ;;  %636 = vmatmul.mubr.f32.gmra.mrb[2].mxu1 %v2378_v18  ;;  %v456_v26 = vld [vmem:[%s2215_s8 + $0x500] sm:$0xff] }
  0xe7   : > { %v1401_v30 = vpack.c.bf16 %v462_v27, %v456_v26  ;;  %v806_v26 = vld [vmem:[%s2221_s17 + $0x118] sm:$0xff] }
  0xe9   : > { %1362 = vmatpush1.bf16.msra.mxu0 %v1361_v31  ;;  %v1403_v31 = vpack.c.bf16 %v475_v29, %v469_v28  ;;  %v803_v28 = vld [vmem:[%s2221_s17 + $0x100] sm:$0xff]  ;;  %v805_v29 = vld [vmem:[%s2221_s17 + $0x110] sm:$0xff] }
  0xea   : > { %1364 = vmatprep.subr.bf16.mxu0 %v1363_v32  ;;  %v468_v32 = vld [vmem:[%s2215_s8 + $0x560] sm:$0xff] }
  0xeb   : > { %v1405_v35 = vpack.c.bf16 %v474_v33, %v468_v32  ;;  %v838_v32 = vld [vmem:[%s2221_s17 + $0x218] sm:$0xff]  ;;  %v835_v33 = vld [vmem:[%s2221_s17 + $0x200] sm:$0xff] }
  0xed   : > { %1366 = vmatpush1.bf16.msra.mxu0 %v1365_v36  ;;  %v1407_v36 = vpack.c.bf16 %v487_v39, %v481_v34  ;;  %v837_v34 = vld [vmem:[%s2221_s17 + $0x210] sm:$0xff] }
  0xee   : > { %1368 = vmatprep.subr.bf16.mxu0 %v1367_v37  ;;  %v480_v37 = vld [vmem:[%s2215_s8 + $0x5c0] sm:$0xff] }
  0xef   : > { %v1409_v40 = vpack.c.bf16 %v486_v38, %v480_v37  ;;  %v810_v37 = vld [vmem:[%s2221_s17 + $0x138] sm:$0xff] }
  0xf1   : > { %1370 = vmatpush1.bf16.msra.mxu0 %v1369_v43  ;;  %v1411_v43 = vpack.c.bf16 %v774_v42, %v772_v41  ;;  %v809_v41 = vld [vmem:[%s2221_s17 + $0x130] sm:$0xff]  ;;  %v840_v42 = vld [vmem:[%s2221_s17 + $0x228] sm:$0xff] }
  0xf2   : > { %1372 = vmatprep.subr.bf16.mxu0 %v1371_v44  ;;  %v771_v44 = vld [vmem:[%s2221_s17] sm:$0xff] }
  0xf3   : > { %v1413_v46 = vpack.c.bf16 %v773_v45, %v771_v44  ;;  %1412 = vmatprep.subr.bf16.mxu1 %v1411_v43  ;;  %v842_v44 = vld [vmem:[%s2221_s17 + $0x238] sm:$0xff]  ;;  %v839_v45 = vld [vmem:[%s2221_s17 + $0x220] sm:$0xff] }
  0xf5   : > { %1374 = vmatpush1.bf16.msra.mxu0 %v1373_v49  ;;  %1414 = vmatpush1.bf16.msra.mxu1 %v1413_v46  ;;  %v841_v46 = vld [vmem:[%s2221_s17 + $0x230] sm:$0xff] }
  0xf6   : > { %1376 = vmatprep.subr.bf16.mxu0 %v1375_v50  ;;  %v780_v50 = vld [vmem:[%s2221_s17 + $0x48] sm:$0xff] }
  0xf7   : > { %v1419_v52 = vpack.c.bf16 %v782_v51, %v780_v50  ;;  %v813_v50 = vld [vmem:[%s2221_s17 + $0x150] sm:$0xff]  ;;  %v844_v51 = vld [vmem:[%s2221_s17 + $0x248] sm:$0xff] }
  0xf9   : > { %1378 = vmatpush1.bf16.msra.mxu0 %v1377_v55  ;;  %v1421_v55 = vpack.c.bf16 %v781_v54, %v779_v53  ;;  %v846_v53 = vld [vmem:[%s2221_s17 + $0x258] sm:$0xff]  ;;  %v843_v54 = vld [vmem:[%s2221_s17 + $0x240] sm:$0xff] }
  0xfa   : > { %1380 = vmatprep.subr.bf16.mxu0 %v1379_v56  ;;  %v784_v56 = vld [vmem:[%s2221_s17 + $0x68] sm:$0xff] }
  0xfb   : > { %v1423_v58 = vpack.c.bf16 %v786_v57, %v784_v56  ;;  %v2510_v56 = vpack.c.bf16 %v846_v53, %v844_v51  ;;  %v864_v51 = vld [vmem:[%s2221_s17 + $0x2e8] sm:$0xff]  ;;  %v866_v53 = vld [vmem:[%s2221_s17 + $0x2f8] sm:$0xff] }
  0xfd   : > { %1382 = vmatpush1.bf16.msra.mxu0 %v1381_v61  ;;  %v1425_v61 = vpack.c.bf16 %v785_v60, %v783_v59  ;;  %v818_v59 = vld [vmem:[%s2221_s17 + $0x178] sm:$0xff]  ;;  %v815_v60 = vld [vmem:[%s2221_s17 + $0x160] sm:$0xff] }
  0xfe   : > { %1384 = vmatprep.subr.bf16.mxu0 %v1383_v62  ;;  %v788_v62 = vld [vmem:[%s2221_s17 + $0x88] sm:$0xff] }
  0xff   : > { %v1427_v0 = vpack.c.bf16 %v790_v63, %v788_v62  ;;  %v817_v62 = vld [vmem:[%s2221_s17 + $0x170] sm:$0xff]  ;;  %v848_v63 = vld [vmem:[%s2221_s17 + $0x268] sm:$0xff] }
 0x101   : > { %1386 = vmatpush1.bf16.msra.mxu0 %v1385_v4  ;;  %v1429_v4 = vpack.c.bf16 %v789_v2, %v787_v1  ;;  %v1457_v1 = vpack.c.bf16 %v817_v62, %v815_v60  ;;  %v1903_v60 = vmov 0.0  }
 0x102   : > { %1388 = vmatprep.subr.bf16.mxu0 %v1387_v5  ;;  %v792_v5 = vld [vmem:[%s2221_s17 + $0xa8] sm:$0xff] }
 0x103   : > { %v1431_v7 = vpack.c.bf16 %v794_v6, %v792_v5  ;;  %v849_v5 = vld [vmem:[%s2221_s17 + $0x270] sm:$0xff]  ;;  %v820_v6 = vld [vmem:[%s2221_s17 + $0x188] sm:$0xff] }
 0x105   : > { %1390 = vmatpush1.bf16.msra.mxu0 %v1389_v11  ;;  %v1433_v11 = vpack.c.bf16 %v793_v9, %v791_v8  ;;  %v822_v8 = vld [vmem:[%s2221_s17 + $0x198] sm:$0xff]  ;;  %v819_v9 = vld [vmem:[%s2221_s17 + $0x180] sm:$0xff] }
 0x106   : > { %1392 = vmatprep.subr.bf16.mxu0 %v1391_v12  ;;  %v796_v12 = vld [vmem:[%s2221_s17 + $0xc8] sm:$0xff] }
 0x107   : > { %v1435_v14 = vpack.c.bf16 %v798_v13, %v796_v12  ;;  %v1459_v12 = vpack.c.bf16 %v822_v8, %v820_v6  ;;  %v852_v13 = vld [vmem:[%s2221_s17 + $0x288] sm:$0xff] }
 0x109   : > { %1394 = vmatpush1.bf16.msra.mxu0 %v1393_v17  ;;  %v1437_v17 = vpack.c.bf16 %v797_v16, %v795_v15  ;;  %v851_v15 = vld [vmem:[%s2221_s17 + $0x280] sm:$0xff] }
 0x10a   : > { %1396 = vmatprep.subr.bf16.mxu0 %v1395_v19  ;;  %v800_v19 = vld [vmem:[%s2221_s17 + $0xe8] sm:$0xff] }
 0x10b   : > { %v1439_v21 = vpack.c.bf16 %v802_v20, %v800_v19  ;;  %v853_v19 = vld [vmem:[%s2221_s17 + $0x290] sm:$0xff]  ;;  %v824_v20 = vld [vmem:[%s2221_s17 + $0x1a8] sm:$0xff] }
 0x10d   : > { %1398 = vmatpush1.bf16.msra.mxu0 %v1397_v24  ;;  %v1441_v24 = vpack.c.bf16 %v801_v23, %v799_v22  ;;  %v823_v23 = vld [vmem:[%s2221_s17 + $0x1a0] sm:$0xff] }
 0x10e   : > { %1400 = vmatprep.subr.bf16.mxu0 %v1399_v25  ;;  %v804_v25 = vld [vmem:[%s2221_s17 + $0x108] sm:$0xff] }
 0x10f   : > { %v1443_v27 = vpack.c.bf16 %v806_v26, %v804_v25  ;;  %v856_v25 = vld [vmem:[%s2221_s17 + $0x2a8] sm:$0xff]  ;;  %v2545_v26 = vpack.c.bf16 %v853_v19, %v851_v15 }
 0x111   : > { %1402 = vmatpush1.bf16.msra.mxu0 %v1401_v30  ;;  %v836_v30 = vld [vmem:[%s2221_s17 + $0x208] sm:$0xff] }
 0x112   : > { %1404 = vmatprep.subr.bf16.mxu0 %v1403_v31  ;;  %v1445_v31 = vpack.c.bf16 %v805_v29, %v803_v28  ;;  %v2482_v39 = vpack.c.bf16 %v838_v32, %v836_v30  ;;  %v855_v28 = vld [vmem:[%s2221_s17 + $0x2a0] sm:$0xff]  ;;  %v857_v30 = vld [vmem:[%s2221_s17 + $0x2b0] sm:$0xff]  ;;  %v830_v32 = vld [vmem:[%s2221_s17 + $0x1d8] sm:$0xff] }
 0x115   : > { %1406 = vmatpush1.bf16.msra.mxu0 %v1405_v35  ;;  %v2484_v35 = vpack.c.bf16 %v837_v34, %v835_v33  ;;  %v860_v34 = vld [vmem:[%s2221_s17 + $0x2c8] sm:$0xff] }
 0x116   : > { %1408 = vmatprep.subr.bf16.mxu0 %v1407_v36  ;;  %v808_v36 = vld [vmem:[%s2221_s17 + $0x128] sm:$0xff] }
 0x117   : > { %v1447_v38 = vpack.c.bf16 %v810_v37, %v808_v36  ;;  %v862_v36 = vld [vmem:[%s2221_s17 + $0x2d8] sm:$0xff] }
 0x119   : > { %1410 = vmatpush1.bf16.msra.mxu0 %v1409_v40  ;;  %v807_v40 = vld [vmem:[%s2221_s17 + $0x120] sm:$0xff] }
 0x11a   : > { %1476 = vmatprep.subr.bf16.mxu0 %v2482_v39  ;;  %v1449_v43 = vpack.c.bf16 %v809_v41, %v807_v40  ;;  %v829_v40 = vld [vmem:[%s2221_s17 + $0x1d0] sm:$0xff]  ;;  %v2560_v41 = vpack.c.bf16 %v857_v30, %v855_v28 }
 0x11c   : > { %707 = vmatmul.mubr.f32.vlgmr.msra.gmra.mrb[4].mxu0 %v2362_v3  ;;  %v1415_v3 = vpack.c.bf16 %v778_v48, %v776_v47  ;;  %v2496_v47 = vpack.c.bf16 %v842_v44, %v840_v42  ;;  %v2498_v48 = vpack.c.bf16 %v841_v46, %v839_v45  ;;  %v832_v42 = vld [vmem:[%s2221_s17 + $0x1e8] sm:$0xff]  ;;  %v2565_v44 = vpack.c.bf16 %v862_v36, %v860_v34  ;;  %v859_v45 = vld [vmem:[%s2221_s17 + $0x2c0] sm:$0xff]  ;;  %v861_v46 = vld [vmem:[%s2221_s17 + $0x2d0] sm:$0xff] }
 0x11d   : > { %712 = vmatprep.mubr.f32.mxu0 %v2369_v10  ;;  %v775_v10 = vld [vmem:[%s2221_s17 + $0x20] sm:$0xff]  ;;  %1478 = vmatpush1.bf16.msra.mxu0 %v2484_v35 }
 0x11e   : > { %1416 = vmatprep.subr.bf16.mxu1 %v1415_v3  ;;  %v812_v3 = vld [vmem:[%s2221_s17 + $0x148] sm:$0xff]  ;;  %1480 = vmatprep.subr.bf16.mxu0 %v2496_v47 }
 0x120   : > { %713 = vmatmul.mubr.f32.gmra.mrb[6].mxu0 %v2378_v18  ;;  %v777_v18 = vld [vmem:[%s2221_s17 + $0x30] sm:$0xff] }
 0x121   : > { %v1417_v49 = vpack.c.bf16 %v777_v18, %v775_v10  ;;  %v814_v10 = vld [vmem:[%s2221_s17 + $0x158] sm:$0xff]  ;;  %1482 = vmatpush1.bf16.msra.mxu0 %v2498_v48  ;;  %1008 = vmatprep.mubr.f32.mxu0 %v1903_v60 }
 0x122   : > { %v1451_v18 = vpack.c.bf16 %v814_v10, %v812_v3  ;;  %1484 = vmatprep.subr.bf16.mxu0 %v2510_v56 }
 0x123   : > { %1418 = vmatpush1.bf16.msra.mxu1 %v1417_v49  ;;  %v811_v49 = vld [vmem:[%s2221_s17 + $0x140] sm:$0xff] }
 0x124   : > { %1420 = vmatprep.subr.bf16.mxu1 %v1419_v52  ;;  %v1453_v52 = vpack.c.bf16 %v813_v50, %v811_v49  ;;  %v831_v49 = vld [vmem:[%s2221_s17 + $0x1e0] sm:$0xff]  ;;  %v833_v50 = vld [vmem:[%s2221_s17 + $0x1f0] sm:$0xff] }
 0x127   : > { %1422 = vmatpush1.bf16.msra.mxu1 %v1421_v55  ;;  %v845_v55 = vld [vmem:[%s2221_s17 + $0x250] sm:$0xff] }
 0x128   : > { %1424 = vmatprep.subr.bf16.mxu1 %v1423_v58  ;;  %v2512_v57 = vpack.c.bf16 %v845_v55, %v843_v54  ;;  %v816_v58 = vld [vmem:[%s2221_s17 + $0x168] sm:$0xff]  ;;  %v863_v54 = vld [vmem:[%s2221_s17 + $0x2e0] sm:$0xff]  ;;  %v865_v55 = vld [vmem:[%s2221_s17 + $0x2f0] sm:$0xff] }
 0x12a   : > { %1486 = vmatpush1.bf16.msra.mxu0 %v2512_v57 }
 0x12b   : > { %1426 = vmatpush1.bf16.msra.mxu1 %v1425_v61  ;;  %v1455_v61 = vpack.c.bf16 %v818_v59, %v816_v58  ;;  %v2580_v58 = vpack.c.bf16 %v866_v53, %v864_v51  ;;  %v2582_v59 = vpack.c.bf16 %v865_v55, %v863_v54 }
 0x12c   : > { %1428 = vmatprep.subr.bf16.mxu1 %v1427_v0  ;;  %v850_v0 = vld [vmem:[%s2221_s17 + $0x278] sm:$0xff] }
 0x12d   : > { %v2521_v2 = vpack.c.bf16 %v850_v0, %v848_v63 }
 0x12f   : > { %1430 = vmatpush1.bf16.msra.mxu1 %v1429_v4  ;;  %v847_v4 = vld [vmem:[%s2221_s17 + $0x260] sm:$0xff]  ;;  %1488 = vmatprep.subr.bf16.mxu0 %v2521_v2 }
 0x130   : > { %1432 = vmatprep.subr.bf16.mxu1 %v1431_v7  ;;  %v2527_v7 = vpack.c.bf16 %v849_v5, %v847_v4 }
 0x132   : > { %1490 = vmatpush1.bf16.msra.mxu0 %v2527_v7 }
 0x133   : > { %1434 = vmatpush1.bf16.msra.mxu1 %v1433_v11  ;;  %v821_v11 = vld [vmem:[%s2221_s17 + $0x190] sm:$0xff] }
 0x134   : > { %1436 = vmatprep.subr.bf16.mxu1 %v1435_v14  ;;  %v854_v14 = vld [vmem:[%s2221_s17 + $0x298] sm:$0xff]  ;;  %v1461_v16 = vpack.c.bf16 %v821_v11, %v819_v9 }
 0x137   : > { %1438 = vmatpush1.bf16.msra.mxu1 %v1437_v17  ;;  %v2536_v17 = vpack.c.bf16 %v854_v14, %v852_v13 }
 0x138   : > { %1440 = vmatprep.subr.bf16.mxu1 %v1439_v21  ;;  %v826_v21 = vld [vmem:[%s2221_s17 + $0x1b8] sm:$0xff] }
 0x139   : > { %v1463_v22 = vpack.c.bf16 %v826_v21, %v824_v20  ;;  %1492 = vmatprep.subr.bf16.mxu0 %v2536_v17 }
 0x13a   : > { %1494 = vmatpush1.bf16.msra.mxu0 %v2545_v26 }
 0x13b   : > { %1442 = vmatpush1.bf16.msra.mxu1 %v1441_v24  ;;  %v825_v24 = vld [vmem:[%s2221_s17 + $0x1b0] sm:$0xff] }
 0x13c   : > { %1444 = vmatprep.subr.bf16.mxu1 %v1443_v27  ;;  %v858_v27 = vld [vmem:[%s2221_s17 + $0x2b8] sm:$0xff]  ;;  %v1465_v33 = vpack.c.bf16 %v825_v24, %v823_v23 }
 0x13d   : > { %v2550_v29 = vpack.c.bf16 %v858_v27, %v856_v25 }
 0x13f   : > { %1446 = vmatpush1.bf16.msra.mxu1 %v1445_v31  ;;  %v828_v31 = vld [vmem:[%s2221_s17 + $0x1c8] sm:$0xff]  ;;  %1496 = vmatprep.subr.bf16.mxu0 %v2550_v29 }
 0x140   : > { %1448 = vmatprep.subr.bf16.mxu1 %v1447_v38  ;;  %v1467_v37 = vpack.c.bf16 %v830_v32, %v828_v31  ;;  %v827_v38 = vld [vmem:[%s2221_s17 + $0x1c0] sm:$0xff]  ;;  %1498 = vmatpush1.bf16.msra.mxu0 %v2560_v41 }
 0x141   : > { %v1469_v3 = vpack.c.bf16 %v829_v40, %v827_v38  ;;  %1500 = vmatprep.subr.bf16.mxu0 %v2565_v44 }
 0x143   : > { %1450 = vmatpush1.bf16.msra.mxu1 %v1449_v43  ;;  %v834_v43 = vld [vmem:[%s2221_s17 + $0x1f8] sm:$0xff] }
 0x144   : > { %1452 = vmatprep.subr.bf16.mxu1 %v1451_v18  ;;  %v1471_v10 = vpack.c.bf16 %v834_v43, %v832_v42  ;;  %v2570_v18 = vpack.c.bf16 %v861_v46, %v859_v45 }
 0x146   : > { %1502 = vmatpush1.bf16.msra.mxu0 %v2570_v18 }
 0x147   : > { %1454 = vmatpush1.bf16.msra.mxu1 %v1453_v52  ;;  %v1473_v52 = vpack.c.bf16 %v833_v50, %v831_v49  ;;  %1504 = vmatprep.subr.bf16.mxu0 %v2580_v58 }
 0x148   : > { %1456 = vmatprep.subr.bf16.mxu1 %v1455_v61 }
 0x14a   : > { %1506 = vmatpush1.bf16.msra.mxu0 %v2582_v59 }
 0x14b   : > { %1458 = vmatpush1.bf16.msra.mxu1 %v1457_v1 }
 0x14c   : > { %1460 = vmatprep.subr.bf16.mxu1 %v1459_v12 }
 0x14f   : > { %1462 = vmatpush1.bf16.msra.mxu1 %v1461_v16 }
 0x150   : > { %1464 = vmatprep.subr.bf16.mxu1 %v1463_v22 }
 0x153   : > { %1466 = vmatpush1.bf16.msra.mxu1 %v1465_v33 }
 0x154   : > { %1468 = vmatprep.subr.bf16.mxu1 %v1467_v37 }
 0x157   : > { %1470 = vmatpush1.bf16.msra.mxu1 %v1469_v3 }
 0x158   : > { %1472 = vmatprep.subr.bf16.mxu1 %v1471_v10 }
 0x15b   : > { %1474 = vmatpush1.bf16.msra.mxu1 %v1473_v52 }
 0x15c   : > { %1507 = vmatprep.subr.bf16.mxu1 %v2482_v39 }
 0x1af   : > { %v554_v61 = vpop.f32.mrb[0].mxu0 }
 0x1b0   : > { %v1198_v62 = vmul.f32 -1.442695, %v554_v61  ;;  %v556_v63 = vpop.f32.mrb[1].mxu0 }
 0x1b1   : > { %v1199_v19 = vmul.f32 -1.442695, %v556_v63 }
 0x1b2   : > { %1652 = vpow2.f32 %v1198_v62 }
 0x1b3   : > { %v560_v0 = vpop.f32.mrb[2].mxu0 }
 0x1b4   : > { %v1201_v1 = vmul.f32 -1.442695, %v560_v0  ;;  %v562_v4 = vpop.f32.mrb[3].mxu0 }
 0x1b5   : > { %v631_v5 = vpop.f32.mrb[0].mxu1  ;;  %v1202_v24 = vmul.f32 -1.442695, %v562_v4 }
 0x1b6   : > { %1654 = vpow2.f32 %v1201_v1  ;;  %v633_v6 = vpop.f32.mrb[1].mxu1  ;;  %v1200_v16 = vmul.f32 -1.442695, %v631_v5 }
 0x1b9   : > { %v637_v11 = vpop.f32.mrb[2].mxu1 }
 0x1ba   : > { %v639_v12 = vpop.f32.mrb[3].mxu1  ;;  %v1203_v23 = vmul.f32 -1.442695, %v637_v11 }
 0x1bc   : > { %v1653_v8 = vpop.eup %1652 }
 0x1bd   : > { %v737_v9 = vadd.f32 1.0, %v1653_v8 }
 0x1bf   : > { %1656 = vrcp.f32 %v737_v9 }
 0x1c0   : > { %v1655_v39 = vpop.eup %1654 }
 0x1c1   : > { %v740_v13 = vadd.f32 1.0, %v1655_v39 }
 0x1c3   : > { %1658 = vrcp.f32 %v740_v13 }
 0x1c4   : > { %1660 = vpow2.f32 %v1200_v16 }
 0x1c5   : > { %1662 = vpow2.f32 %v1199_v19 }
 0x1c6   : > { %1664 = vpow2.f32 %v1203_v23 }
 0x1c7   : > { %1666 = vpow2.f32 %v1202_v24 }
 0x1c9   : > { %v1657_v14 = vpop.eup %1656 }
 0x1ca   : > { %v755_v15 = vmul.f32 %v1657_v14, %v554_v61 }
 0x1cc   : > { %v761_v20 = vmul.f32 %v755_v15, %v633_v6 }
 0x1cd   : > { %v1659_v21 = vpop.eup %1658 }
 0x1ce   : > { %v758_v22 = vmul.f32 %v1659_v21, %v560_v0  ;;  %v1661_v27 = vpop.eup %1660 }
 0x1cf   : > { %v1663_v28 = vpop.eup %1662  ;;  %v739_v30 = vadd.f32 1.0, %v1661_v27 }
 0x1d0   : > { %v764_v25 = vmul.f32 %v758_v22, %v639_v12  ;;  %v1665_v31 = vpop.eup %1664  ;;  %v738_v32 = vadd.f32 1.0, %v1663_v28 }
 0x1d1   : > { %v1667_v33 = vpop.eup %1666  ;;  %1668 = vrcp.f32 %v739_v30  ;;  %v742_v34 = vadd.f32 1.0, %v1665_v31 }
 0x1d2   : > { %1670 = vrcp.f32 %v738_v32  ;;  %v741_v36 = vadd.f32 1.0, %v1667_v33 }
 0x1d3   : > { %1672 = vrcp.f32 %v742_v34 }
 0x1d4   : > { %1674 = vrcp.f32 %v741_v36 }
 0x1db   : > { %v1669_v37 = vpop.eup %1668 }
 0x1dc   : > { %v1671_v38 = vpop.eup %1670  ;;  %v757_v40 = vmul.f32 %v1669_v37, %v631_v5 }
 0x1dd   : > { %v1673_v42 = vpop.eup %1672  ;;  %v756_v43 = vmul.f32 %v1671_v38, %v556_v63 }
 0x1de   : > { %v1675_v45 = vpop.eup %1674  ;;  %v760_v49 = vmul.f32 %v1673_v42, %v637_v11 }
 0x1df   : > { %v759_v51 = vmul.f32 %v1675_v45, %v562_v4 }
 0x1ef   : > { %v708_v46 = vpop.f32.mrb[4].mxu0 }
 0x1f0   : > { %v762_v3 = vmul.f32 %v756_v43, %v708_v46  ;;  %v710_v10 = vpop.f32.mrb[5].mxu0 }
 0x1f1   : > { %v763_v50 = vmul.f32 %v757_v40, %v710_v10 }
 0x1f2   : > { %931 = vmatprep.mubr.f32.mxu1 %v762_v3 }
 0x1f3   : > { %v714_v52 = vpop.f32.mrb[6].mxu0  ;;  %932 = vmatmul.mubr.f32.vlgmr.msra.gmra.mrb[4].mxu1 %v761_v20  ;;  %1009 = vmatmul.mubr.f32.vlgmr.msra.gmra.mrb[8].mxu0 %v763_v50 }
 0x1f4   : > { %v765_v53 = vmul.f32 %v759_v51, %v714_v52  ;;  %1515 = vmatpush1.bf16.msra.mxu1 %v2484_v35  ;;  %v716_v54 = vpop.f32.mrb[7].mxu0 }
 0x1f5   : > { %v766_v55 = vmul.f32 %v760_v49, %v716_v54  ;;  %1508 = vmatprep.subr.bf16.mxu1 %v2496_v47  ;;  %v767_v47 = vld [vmem:[#allocation2] sm:$0xff] }
 0x1f6   : > { %937 = vmatprep.mubr.f32.mxu1 %v765_v53 }
 0x1f7   : > { %938 = vmatmul.mubr.f32.gmra.mrb[6].mxu1 %v764_v25 }
 0x1f8   : > { %1516 = vmatpush1.bf16.msra.mxu1 %v2498_v48  ;;  %1014 = vmatprep.mubr.f32.mxu1 %v1903_v60 }
 0x1f9   : > { %1509 = vmatprep.subr.bf16.mxu1 %v2510_v56 }
 0x1fc   : > { %1517 = vmatpush1.bf16.msra.mxu1 %v2512_v57 }
 0x1fd   : > { %1510 = vmatprep.subr.bf16.mxu1 %v2521_v2  ;;  %v768_v2 = vld [vmem:[#allocation2 + $0x8] sm:$0xff] }
 0x200   : > { %1518 = vmatpush1.bf16.msra.mxu1 %v2527_v7 }
 0x201   : > { %1511 = vmatprep.subr.bf16.mxu1 %v2536_v17 }
 0x204   : > { %1519 = vmatpush1.bf16.msra.mxu1 %v2545_v26 }
 0x205   : > { %1512 = vmatprep.subr.bf16.mxu1 %v2550_v29 }
 0x208   : > { %1520 = vmatpush1.bf16.msra.mxu1 %v2560_v41  ;;  %v769_v41 = vld [vmem:[#allocation2 + $0x10] sm:$0xff] }
 0x209   : > { %1513 = vmatprep.subr.bf16.mxu1 %v2565_v44  ;;  %v770_v44 = vld [vmem:[#allocation2 + $0x18] sm:$0xff] }
 0x20c   : > { %1521 = vmatpush1.bf16.msra.mxu1 %v2570_v18 }
 0x20d   : > { %1514 = vmatprep.subr.bf16.mxu1 %v2580_v58 }
 0x210   : > { %1522 = vmatpush1.bf16.msra.mxu1 %v2582_v59 }
 0x213   : > { %1015 = vmatmul.mubr.f32.vlgmr.msra.gmra.mrb[6].mxu1 %v766_v55 }
 0x2c6   : > { %v933_v35 = vpop.f32.mrb[4].mxu1  ;;  %v1010_v48 = vpop.f32.mrb[8].mxu0 }
 0x2c7   : > { %v1011_v56 = vadd.f32 %v1010_v48, %v933_v35  ;;  %v935_v57 = vpop.f32.mrb[5].mxu1  ;;  %v1012_v7 = vpop.f32.mrb[9].mxu0 }
 0x2c8   : > { %v1013_v17 = vadd.f32 %v1012_v7, %v935_v57 }
 0x2c9   : > { %v1021_v26 = vadd.f32 %v1011_v56, %v767_v47 }
 0x2ca   : > { %v1022_v29 = vadd.f32 %v1013_v17, %v768_v2 }
 0x2cb   : > { %1025 = vst [vmem:[#allocation2] sm:$0xff] %v1021_v26 }
 0x2cc   : > { %1026 = vst [vmem:[#allocation2 + $0x8] sm:$0xff] %v1022_v29 }
 0x2d2   : > { %v1033_v59 = vld [vmem:[#allocation2] sm:$0xff] (!%p1204_p12) }
 0x2d3   : > { %v1034_v62 = vld [vmem:[#allocation2 + $0x8] sm:$0xff] (!%p1204_p12)  ;;  %1037 = vst [vmem:[%s2223_s3] sm:$0xff] (!%p1204_p12), %v1033_v59 }
 0x2d4   : > { %1038 = vst [vmem:[%s2223_s3 + $0x8] sm:$0xff] (!%p1204_p12), %v1034_v62 }
 0x2e4   : > { %1032 = sbr.rel (%p1204_p12) target bundleno = 755 (0x2f3), region = 52 }
 0x2e6   : > { %v1016_v18 = vpop.f32.mrb[6].mxu1 }
 0x2e7   : > { %v1023_v60 = vadd.f32 %v1016_v18, %v769_v41  ;;  %v1018_v58 = vpop.f32.mrb[7].mxu1 }
 0x2e8   : > { %v1024_v61 = vadd.f32 %v1018_v58, %v770_v44 }
 0x2e9   : > { %1027 = vst [vmem:[#allocation2 + $0x10] sm:$0xff] %v1023_v60 }
 0x2ea   : > { %1028 = vst [vmem:[#allocation2 + $0x18] sm:$0xff] %v1024_v61 }
 0x2f0   : > { %v1035_v63 = vld [vmem:[#allocation2 + $0x10] sm:$0xff] }
 0x2f1   : > { %1039 = vst [vmem:[%s2223_s3 + $0x10] sm:$0xff] %v1035_v63  ;;  %v1036_v0 = vld [vmem:[#allocation2 + $0x18] sm:$0xff] }
 0x2f2   : > { %1040 = vst [vmem:[%s2223_s3 + $0x18] sm:$0xff] %v1036_v0 }
 0x2f3 PF: > { %s1217_s27 = sshll.u32 %s1880_s19, 9  ;;  %s2725_s10 = sld [smem:[#allocation21_spill]] }
 0x2f4   : > { %s1056_s12 = sshll.u32 %s2223_s3, 4  ;;  %s1042_s5 = scalar_lea.sflag [#allocation5], %s2203_s0  ;;  %s2616_s12 = int_to_ptr.vmem [resolvable:$true] %s1056_s12 }
 0x2f5   : > { %s1766_s1 = scalar_lea.vmem %s2616_s12, 512  ;;  %p2726_p11 = scmp.ne.s32.totalorder %s2713_s6, 0 }
 0x2f6   : > { %p1767_p13 = scmp.ne.s32.totalorder %s2616_s12, %s1766_s1  ;;  %s1904_s7 = smov [#allocation9]  }
 0x2f7   : > { %s1770_s26 = sshll.u32 %s1904_s7, 4  ;;  %s1771_s26 = int_to_ptr.vmem [resolvable:$false] %s1770_s26 }
 0x2f8   : > { %p1768_p6 = pnand %p1767_p13, %p2726_p11  ;;  %s1772_s19 = scalar_lea.vmem %s1771_s26, 1024 }
 0x2f9   : > { %s2613_s28 = scalar_lea.hbm %s2725_s10, %s1217_s27  ;;  %p1773_p5 = scmp.lt.s32.totalorder %s2616_s12, %s1771_s26 }
 0x2fa   : > { %p1769_p10 = pneg %p1768_p6  ;;  %p1774_p1 = scmp.lt.s32.totalorder %s1772_s19, %s1766_s1 }
 0x2fc   : > { %p1775_p0 = por %p1774_p1, %p1773_p5 }
 0x2fe   : > { %p1776_p9 = pnand %p1775_p0, %p1769_p10 }
 0x300   : > { %1779 = shalt.err (!%p1776_p9)
}
 0x301   : > { %s1780_s9 = scalar_lea.hbm %s2613_s28, 512  ;;  %s1784_s11 = scalar_lea.hbm %s2725_s10, 1024 }
 0x302   : > { %p1781_p2 = scmp.ne.s32.totalorder %s2613_s28, %s1780_s9  ;;  %p1785_p7 = scmp.lt.u32.totalorder %s2613_s28, %s2725_s10 }
 0x303   : > { %p1786_p8 = scmp.lt.u32.totalorder %s1784_s11, %s1780_s9  ;;  %p1788_p13 = scmp.lt.u32.totalorder %s1780_s9, %s2613_s28 }
 0x304   : > { %p1782_p3 = pnand %p1781_p2, %p2726_p11 }
 0x305   : > { %p1787_p12 = por %p1786_p8, %p1785_p7 }
 0x306   : > { %p1783_p4 = pneg %p1782_p3 }
 0x307   : > { %p1789_p6 = por %p1788_p13, %p1787_p12 }
 0x309   : > { %p1790_p10 = pnand %p1789_p6, %p1783_p4 }
 0x30b   : > { %1793 = shalt.err (!%p1790_p10)
}
 0x30c   : > { %s1905_s8 = smov 256   ;;  %s1906_s21 = smov 16  }
 0x30d   : > { %1537 = dma.vmem_to_hbm [thread:$0]  (%p2726_p11), %s2616_s12, 512, %s2613_s28, %s1042_s5, %s1905_s8, %s1905_s8, %s1906_s21  }
 0x30e PF: > { %p1554_p5 = scmp.ge.s32.totalorder %s1892_s22, 2  ;;  %s1071_s17 = sand.u32 1, %s1864_s15  }
 0x30f   : > { %p2727_p1 = scmp.ne.s32.totalorder %s2715_s23, 0  ;;  %s1072_s3 = scalar_lea.sflag [#allocation5], %s1071_s17 }
 0x311   : > { %p1550_p0 = pnand %p1554_p5, %p2727_p1 }
 0x313   : > { %1847 = dma.done.wait (!%p1550_p0), %s1072_s3, 512  }
 0x314   : > { %1849 = vsyncadd (!%p1550_p0), %s1072_s3, 4294966784  ;;  %s22_s22 = sadd.s32 1, %s1892_s22   ;;  %s2728_s27 = sld [smem:[#allocation16_spill]] }
 0x315   : > { %p19_p9 = scmp.ge.s32.totalorder %s22_s22, 6   ;;  %s2729_s6 = sld [smem:[#allocation13_spill]] }
 0x316   : > { %s2730_s17 = sld [smem:[#allocation18_spill]]  ;;  %s2731_s19 = sld [smem:[#allocation14_spill]] }
 0x317   : > { %s2732_s0 = sld [smem:[#allocation15_spill]]  ;;  %s2733_s21 = sld [smem:[#allocation17_spill]] }
 0x318   : > { %s2734_s12 = smov %s1856_s13  ;;  %s2735_s13 = smov %s1860_s14 }
 0x319   : > { %s2737_s15 = smov %s1868_s16  ;;  %s2739_s18 = smov %s1884_s20 }
 0x31a   : > { %s2736_s14 = smov %s2728_s27  ;;  %21 = sbr.rel (!%p19_p9) target bundleno = 15 (0xf), region = 109 }
 0x31b   : > { %s2738_s16 = smov %s2729_s6 }
 0x31d   : > { %s2740_s20 = smov %s2732_s0 }
 0x321   :  { %1077 = vsyncpa [#allocation4], 1 }
 0x322   :  { %1079 = vsyncpa [#allocation4 + $0x1], 1 }
 0x323   :  { %1080 = vsyncpa [#allocation7], 1 }
 0x324   :  { %1082 = vsyncpa [#allocation7 + $0x1], 1 }
 0x325   :  { %1083 = vsyncpa [#allocation5], 1 }
 0x326   :  { %1085 = vsyncpa [#allocation5 + $0x1], 1 }

</bundles_post_ra>
